<compile_context>
chip_gen: v7x
topology: tpu7x:2x2x1
jax: 0.10.0
libtpu: 0.0.40
codegen_flags: <defaults>
</compile_context>

<pallas_src>
import jax
import jax.numpy as jnp
from jax.experimental import pallas as pl
from jax.experimental.pallas import tpu as pltpu


NERF_LATENT_DIM = 256
GAN_LATENT_DIM = 512
SHAPE_DIM = 100
EXP_DIM = 50
ALBEDO_DIM = 50
LIT_DIM = 27

# ---------------------------------------------------------------------------
# Static layer layout.  10 effective (weight-normalized, head-fused) layers:
#   0..2 : shape trunk   256->256->256->256
#   3    : shape head L1 (latent2shape[0] || latent2exp[0])   256->512
#   4    : shape head L2 block-diag                            512->256
#   5..7 : app trunk     512->512->256->256
#   8    : app head L1  (latent2albedo[0] || latent2lit[0])    256->512
#   9    : app head L2 block-diag                              512->256
# Weights are packed densely into two slabs keyed by output width.
# ---------------------------------------------------------------------------
LAYER_IN = (256, 256, 256, 256, 512, 512, 512, 256, 256, 512)
LAYER_OUT = (256, 256, 256, 512, 256, 512, 256, 256, 512, 256)
N_LAYERS = len(LAYER_IN)

_meta = []
_o256, _o512 = 0, 0
for _din, _dout in zip(LAYER_IN, LAYER_OUT):
    if _dout == 256:
        _meta.append((256, _o256, _din, _dout))
        _o256 += _din
    else:
        _meta.append((512, _o512, _din, _dout))
        _o512 += _din
LAYER_META = tuple(_meta)
W256_ROWS = _o256          # 2560
W512_ROWS = _o512          # 1024
BIAS_WIDTH = 512

# column offsets of the individual codes inside the (B, 512) output slab
SHAPE_COL = 0              # shape branch occupies lanes 0:256
EXP_COL = 128
ALBEDO_COL = 256           # app branch occupies lanes 256:512
LIT_COL = 256 + 128

_FLOPS_PER_ROW = 2 * sum(d_in * d_out for d_in, d_out in zip(LAYER_IN, LAYER_OUT))


def _leaky(x):
    # LeakyReLU(0.2)
    return jnp.where(x > 0, x, 0.2 * x)


def _round_up(x, m):
    return ((x + m - 1) // m) * m


# ---------------------------------------------------------------------------
# Fused kernel: both branches, all 10 layers, one launch, batch-tiled grid.
# ---------------------------------------------------------------------------
def _fused_kernel(xs_ref, xa_ref, w256_ref, w512_ref, b_ref, out_ref):
    def layer(h_f32, idx, final=False):
        slab, r0, din, dout = LAYER_META[idx]
        w_ref = w256_ref if slab == 256 else w512_ref
        y = jnp.dot(h_f32.astype(jnp.bfloat16), w_ref[r0:r0 + din, :],
                    preferred_element_type=jnp.float32)
        y = y + b_ref[idx:idx + 1, 0:dout]
        if final:
            return y                       # f32, no activation
        return _leaky(y)                   # stay in f32 between layers

    # ---- shape/exp branch ----
    h = xs_ref[...]
    for idx in (0, 1, 2, 3):
        h = layer(h, idx)
    out_ref[:, 0:256] = layer(h, 4, final=True)       # lane-dense store

    # ---- albedo/lit branch ----
    h = xa_ref[...]
    for idx in (5, 6, 7, 8):
        h = layer(h, idx)
    out_ref[:, 256:512] = layer(h, 9, final=True)     # lane-dense store


@jax.jit
def latent2code_forward(shape_latent, appearance_latent, packed):
    """Pallas forward: returns dict(expcode, shapecode, litcode, albedocode)."""
    w256, w512, b_slab = packed
    B = shape_latent.shape[0]

    # Pad B so stores are unmasked (f32 sublane = 8) and tiles divide evenly.
    if B >= 256:
        TB = 256
    else:
        TB = _round_up(B, 8)
    B_pad = _round_up(B, TB)
    xs = jnp.pad(shape_latent.astype(jnp.float32), ((0, B_pad - B), (0, 0)))
    xa = jnp.pad(appearance_latent.astype(jnp.float32), ((0, B_pad - B), (0, 0)))

    n_tiles = B_pad // TB
    weight_bytes = W256_ROWS * 256 * 2 + W512_ROWS * 512 * 2 + N_LAYERS * BIAS_WIDTH * 4
    act_bytes = B_pad * (NERF_LATENT_DIM + GAN_LATENT_DIM) * 4 + B_pad * 512 * 4
    cost = pl.CostEstimate(flops=_FLOPS_PER_ROW * B_pad, transcendentals=0,
                           bytes_accessed=weight_bytes + act_bytes)

    out = pl.pallas_call(
        _fused_kernel,
        out_shape=jax.ShapeDtypeStruct((B_pad, 512), jnp.float32),
        grid=(n_tiles,),
        in_specs=[
            pl.BlockSpec((TB, NERF_LATENT_DIM), lambda i: (i, 0)),   # xs
            pl.BlockSpec((TB, GAN_LATENT_DIM), lambda i: (i, 0)),    # xa
            pl.BlockSpec((W256_ROWS, 256), lambda i: (0, 0)),        # resident
            pl.BlockSpec((W512_ROWS, 512), lambda i: (0, 0)),        # resident
            pl.BlockSpec((N_LAYERS, BIAS_WIDTH), lambda i: (0, 0)),  # resident
        ],
        out_specs=pl.BlockSpec((TB, 512), lambda i: (i, 0)),
        compiler_params=pltpu.CompilerParams(
            dimension_semantics=("parallel",)),
        cost_estimate=cost,
    )(xs, xa, w256, w512, b_slab)

    out = out[:B]
    return {
        "shapecode": out[:, SHAPE_COL:SHAPE_COL + SHAPE_DIM],
        "expcode": out[:, EXP_COL:EXP_COL + EXP_DIM],
        "albedocode": out[:, ALBEDO_COL:ALBEDO_COL + ALBEDO_DIM],
        "litcode": out[:, LIT_COL:LIT_COL + LIT_DIM],
    }


# ---------------------------------------------------------------------------
# Parameter construction (deterministic, synthetic).  LinearWN = weight-norm
# Linear:  W_eff = g * V / ||V||_row   (per-output-row norm), forward is
# y = x @ W_eff.T + b.  We compose W_eff in plain-JAX glue and hand the kernel
# the (in, out) transposed effective weight, densely packed into bf16 slabs.
# ---------------------------------------------------------------------------
def _make_linear_wn(key, in_dim, out_dim):
    kv, kg, kb = jax.random.split(key, 3)
    v = jax.random.normal(kv, (out_dim, in_dim), jnp.float32) * 0.01
    g = 1.0 + 0.01 * jax.random.normal(kg, (out_dim,), jnp.float32)
    b = 0.01 * jax.random.normal(kb, (out_dim,), jnp.float32)
    norm = jnp.sqrt(jnp.sum(v * v, axis=1, keepdims=True)) + 1e-12
    w_eff = (g[:, None] * v / norm)          # (out, in)
    return w_eff.T.astype(jnp.float32), b    # kernel wants (in, out)


def build_params(seed=0):
    key = jax.random.PRNGKey(seed)
    keys = iter(jax.random.split(key, 32))

    def lin(i, o):
        return _make_linear_wn(next(keys), i, o)

    params = {
        # Latent2ShapeExpCode: 256->256->256->256 (LeakyReLU after each)
        "shape_fea": [lin(NERF_LATENT_DIM, 256), lin(256, 256), lin(256, 256)],
        # latent2shape: 256->256 (LReLU) -> 100
        "latent2shape": [lin(256, 256), lin(256, SHAPE_DIM)],
        # latent2exp: 256->256 (LReLU) -> 50
        "latent2exp": [lin(256, 256), lin(256, EXP_DIM)],
        # Latent2AlbedoLitCode: 512->512->256->256 (LeakyReLU after each)
        "app_fea": [lin(GAN_LATENT_DIM, 512), lin(512, 256), lin(256, 256)],
        # latent2albedo: 256->256 (LReLU) -> 50
        "latent2albedo": [lin(256, 256), lin(256, ALBEDO_DIM)],
        # latent2lit: 256->256 (LReLU) -> 27
        "latent2lit": [lin(256, 256), lin(256, LIT_DIM)],
    }
    return params


def pack_params(params):
    """Fuse the head MLPs and densely pack weights into two slabs + bias slab."""
    ws1, bs1 = params["latent2shape"][0]
    ws2, bs2 = params["latent2shape"][1]
    we1, be1 = params["latent2exp"][0]
    we2, be2 = params["latent2exp"][1]
    # shape head layer 1: concat -> single (256, 512) matmul
    s_h1_w = jnp.concatenate([ws1, we1], axis=1)
    s_h1_b = jnp.concatenate([bs1, be1], axis=0)
    # shape head layer 2: block diagonal into lane-dense (512, 256)
    s_h2_w = jnp.zeros((512, 256), jnp.float32)
    s_h2_w = s_h2_w.at[0:256, 0:SHAPE_DIM].set(ws2)
    s_h2_w = s_h2_w.at[256:512, EXP_COL:EXP_COL + EXP_DIM].set(we2)
    s_h2_b = jnp.zeros((256,), jnp.float32)
    s_h2_b = s_h2_b.at[0:SHAPE_DIM].set(bs2)
    s_h2_b = s_h2_b.at[EXP_COL:EXP_COL + EXP_DIM].set(be2)

    wa1, ba1 = params["latent2albedo"][0]
    wa2, ba2 = params["latent2albedo"][1]
    wl1, bl1 = params["latent2lit"][0]
    wl2, bl2 = params["latent2lit"][1]
    a_h1_w = jnp.concatenate([wa1, wl1], axis=1)
    a_h1_b = jnp.concatenate([ba1, bl1], axis=0)
    a_h2_w = jnp.zeros((512, 256), jnp.float32)
    a_h2_w = a_h2_w.at[0:256, 0:ALBEDO_DIM].set(wa2)
    a_h2_w = a_h2_w.at[256:512, 128:128 + LIT_DIM].set(wl2)
    a_h2_b = jnp.zeros((256,), jnp.float32)
    a_h2_b = a_h2_b.at[0:ALBEDO_DIM].set(ba2)
    a_h2_b = a_h2_b.at[128:128 + LIT_DIM].set(bl2)

    layers = [
        params["shape_fea"][0], params["shape_fea"][1], params["shape_fea"][2],
        (s_h1_w, s_h1_b), (s_h2_w, s_h2_b),
        params["app_fea"][0], params["app_fea"][1], params["app_fea"][2],
        (a_h1_w, a_h1_b), (a_h2_w, a_h2_b),
    ]
    assert len(layers) == N_LAYERS

    w256_rows, w512_rows, b_rows = [], [], []
    for i, (w, b) in enumerate(layers):
        assert w.shape == (LAYER_IN[i], LAYER_OUT[i]), (i, w.shape)
        assert b.shape == (LAYER_OUT[i],), (i, b.shape)
        if LAYER_OUT[i] == 256:
            w256_rows.append(w)
        else:
            w512_rows.append(w)
        b_rows.append(jnp.pad(b, (0, BIAS_WIDTH - b.shape[0])))

    w256 = jnp.concatenate(w256_rows, axis=0).astype(jnp.bfloat16)
    w512 = jnp.concatenate(w512_rows, axis=0).astype(jnp.bfloat16)
    b_slab = jnp.stack(b_rows, axis=0).astype(jnp.float32)
    assert w256.shape == (W256_ROWS, 256)
    assert w512.shape == (W512_ROWS, 512)
    assert b_slab.shape == (N_LAYERS, BIAS_WIDTH)
    return w256, w512, b_slab


# ---------------------------------------------------------------------------
# Plain-JAX f32 reference (for a sanity check of the kernel path).
# ---------------------------------------------------------------------------
def _mlp_ref(x, layers, relu_last):
    h = x
    n = len(layers)
    for i, (w, b) in enumerate(layers):
        h = h @ w + b
        if relu_last or i < n - 1:
            h = _leaky(h)
    return h


def latent2code_ref(shape_latent, appearance_latent, params):
    fea = _mlp_ref(shape_latent, params["shape_fea"], relu_last=True)
    shapecode = _mlp_ref(fea, params["latent2shape"], relu_last=False)
    expcode = _mlp_ref(fea, params["latent2exp"], relu_last=False)
    app = _mlp_ref(appearance_latent, params["app_fea"], relu_last=True)
    albedocode = _mlp_ref(app, params["latent2albedo"], relu_last=False)
    litcode = _mlp_ref(app, params["latent2lit"], relu_last=False)
    return {
        "expcode": expcode,
        "shapecode": shapecode,
        "litcode": litcode,
        "albedocode": albedocode,
    }


if __name__ == "__main__":
    B = 2
    key = jax.random.PRNGKey(0)
    k1, k2 = jax.random.split(key)
    shape_latent = jax.random.normal(k1, (B, NERF_LATENT_DIM), jnp.float32)
    appearance_latent = jax.random.normal(k2, (B, GAN_LATENT_DIM), jnp.float32)

    params = build_params(seed=0)
    packed = pack_params(params)

    out = latent2code_forward(shape_latent, appearance_latent, packed)
    out = jax.tree_util.tree_map(jax.block_until_ready, out)

    ref = latent2code_ref(shape_latent, appearance_latent, params)

    assert out["shapecode"].shape == (B, SHAPE_DIM)
    assert out["expcode"].shape == (B, EXP_DIM)
    assert out["albedocode"].shape == (B, ALBEDO_DIM)
    assert out["litcode"].shape == (B, LIT_DIM)
    # bf16 weights with f32 activations/accumulation: relative tolerance vs f32.
    for k in out:
        scale = float(jnp.max(jnp.abs(ref[k]))) + 1e-6
        err = float(jnp.max(jnp.abs(out[k] - ref[k])))
        assert err / scale < 5e-2, (k, err, scale)

    print("KERNEL_OK")
</pallas_src>

<mosaic_0001>
module attributes {stable_mosaic.version = 11 : i64} {
  func.func @_fused_kernel(%arg0: i32, %arg1: memref<8x256xf32, #tpu.memory_space<vmem>>, %arg2: memref<8x512xf32, #tpu.memory_space<vmem>>, %arg3: memref<2560x256xbf16, #tpu.memory_space<vmem>>, %arg4: memref<1024x512xbf16, #tpu.memory_space<vmem>>, %arg5: memref<10x512xf32, #tpu.memory_space<vmem>>, %arg6: memref<8x512xf32, #tpu.memory_space<vmem>>) attributes {dimension_semantics = [#tpu.dimension_semantics<parallel>], iteration_bounds = array<i64: 1>, scalar_prefetch = 0 : i64, scratch_operands = 0 : i64, tpu.core_type = #tpu.core_type<tc>, window_params = [{transform_indices = @transform_0, window_bounds = array<i64: 8, 256>}, {transform_indices = @transform_1, window_bounds = array<i64: 8, 512>}, {pipeline_mode = #tpu.pipeline_mode<synchronous>, transform_indices = @transform_2, window_bounds = array<i64: 2560, 256>}, {pipeline_mode = #tpu.pipeline_mode<synchronous>, transform_indices = @transform_3, window_bounds = array<i64: 1024, 512>}, {pipeline_mode = #tpu.pipeline_mode<synchronous>, transform_indices = @transform_4, window_bounds = array<i64: 10, 512>}, {transform_indices = @transform_5, window_bounds = array<i64: 8, 512>}]} {
    %c0 = arith.constant 0 : index
    %c0_0 = arith.constant 0 : index
    %0 = vector.load %arg1[%c0, %c0_0] : memref<8x256xf32, #tpu.memory_space<vmem>>, vector<8x256xf32>
    %1 = arith.truncf %0 : vector<8x256xf32> to vector<8x256xbf16>
    %c0_1 = arith.constant 0 : index
    %c0_2 = arith.constant 0 : index
    %2 = vector.load %arg3[%c0_1, %c0_2] : memref<2560x256xbf16, #tpu.memory_space<vmem>>, vector<256x256xbf16>
    %cst = arith.constant dense<0.000000e+00> : vector<8x256xf32>
    %3 = tpu.matmul %1, %2, %cst {dimension_numbers = #tpu.dot_dimension_numbers<[1], [0], [0], [1], [0, 0, 1, 1], [], []>} : vector<8x256xbf16>, vector<256x256xbf16>, vector<8x256xf32> -> vector<8x256xf32>
    %c0_3 = arith.constant 0 : index
    %c0_4 = arith.constant 0 : index
    %4 = vector.load %arg5[%c0_3, %c0_4] : memref<10x512xf32, #tpu.memory_space<vmem>>, vector<1x256xf32>
    %5 = vector.broadcast %4 : vector<1x256xf32> to vector<8x256xf32>
    %6 = arith.addf %3, %5 : vector<8x256xf32>
    %cst_5 = arith.constant 0.000000e+00 : f32
    %7 = vector.broadcast %cst_5 : f32 to vector<8x256xf32>
    %8 = arith.cmpf ogt, %6, %7 : vector<8x256xf32>
    %cst_6 = arith.constant 2.000000e-01 : f32
    %9 = vector.broadcast %cst_6 : f32 to vector<8x256xf32>
    %10 = arith.mulf %9, %6 : vector<8x256xf32>
    %11 = arith.select %8, %6, %10 : vector<8x256xi1>, vector<8x256xf32>
    %12 = arith.truncf %11 : vector<8x256xf32> to vector<8x256xbf16>
    %c256 = arith.constant 256 : index
    %c0_7 = arith.constant 0 : index
    %13 = vector.load %arg3[%c256, %c0_7] : memref<2560x256xbf16, #tpu.memory_space<vmem>>, vector<256x256xbf16>
    %cst_8 = arith.constant dense<0.000000e+00> : vector<8x256xf32>
    %14 = tpu.matmul %12, %13, %cst_8 {dimension_numbers = #tpu.dot_dimension_numbers<[1], [0], [0], [1], [0, 0, 1, 1], [], []>} : vector<8x256xbf16>, vector<256x256xbf16>, vector<8x256xf32> -> vector<8x256xf32>
    %c1 = arith.constant 1 : index
    %c0_9 = arith.constant 0 : index
    %15 = vector.load %arg5[%c1, %c0_9] : memref<10x512xf32, #tpu.memory_space<vmem>>, vector<1x256xf32>
    %16 = vector.broadcast %15 : vector<1x256xf32> to vector<8x256xf32>
    %17 = arith.addf %14, %16 : vector<8x256xf32>
    %cst_10 = arith.constant 0.000000e+00 : f32
    %18 = vector.broadcast %cst_10 : f32 to vector<8x256xf32>
    %19 = arith.cmpf ogt, %17, %18 : vector<8x256xf32>
    %cst_11 = arith.constant 2.000000e-01 : f32
    %20 = vector.broadcast %cst_11 : f32 to vector<8x256xf32>
    %21 = arith.mulf %20, %17 : vector<8x256xf32>
    %22 = arith.select %19, %17, %21 : vector<8x256xi1>, vector<8x256xf32>
    %23 = arith.truncf %22 : vector<8x256xf32> to vector<8x256xbf16>
    %c512 = arith.constant 512 : index
    %c0_12 = arith.constant 0 : index
    %24 = vector.load %arg3[%c512, %c0_12] : memref<2560x256xbf16, #tpu.memory_space<vmem>>, vector<256x256xbf16>
    %cst_13 = arith.constant dense<0.000000e+00> : vector<8x256xf32>
    %25 = tpu.matmul %23, %24, %cst_13 {dimension_numbers = #tpu.dot_dimension_numbers<[1], [0], [0], [1], [0, 0, 1, 1], [], []>} : vector<8x256xbf16>, vector<256x256xbf16>, vector<8x256xf32> -> vector<8x256xf32>
    %c2 = arith.constant 2 : index
    %c0_14 = arith.constant 0 : index
    %26 = vector.load %arg5[%c2, %c0_14] : memref<10x512xf32, #tpu.memory_space<vmem>>, vector<1x256xf32>
    %27 = vector.broadcast %26 : vector<1x256xf32> to vector<8x256xf32>
    %28 = arith.addf %25, %27 : vector<8x256xf32>
    %cst_15 = arith.constant 0.000000e+00 : f32
    %29 = vector.broadcast %cst_15 : f32 to vector<8x256xf32>
    %30 = arith.cmpf ogt, %28, %29 : vector<8x256xf32>
    %cst_16 = arith.constant 2.000000e-01 : f32
    %31 = vector.broadcast %cst_16 : f32 to vector<8x256xf32>
    %32 = arith.mulf %31, %28 : vector<8x256xf32>
    %33 = arith.select %30, %28, %32 : vector<8x256xi1>, vector<8x256xf32>
    %34 = arith.truncf %33 : vector<8x256xf32> to vector<8x256xbf16>
    %c0_17 = arith.constant 0 : index
    %c0_18 = arith.constant 0 : index
    %35 = vector.load %arg4[%c0_17, %c0_18] : memref<1024x512xbf16, #tpu.memory_space<vmem>>, vector<256x512xbf16>
    %cst_19 = arith.constant dense<0.000000e+00> : vector<8x512xf32>
    %36 = tpu.matmul %34, %35, %cst_19 {dimension_numbers = #tpu.dot_dimension_numbers<[1], [0], [0], [1], [0, 0, 1, 1], [], []>} : vector<8x256xbf16>, vector<256x512xbf16>, vector<8x512xf32> -> vector<8x512xf32>
    %c3 = arith.constant 3 : index
    %c0_20 = arith.constant 0 : index
    %37 = vector.load %arg5[%c3, %c0_20] : memref<10x512xf32, #tpu.memory_space<vmem>>, vector<1x512xf32>
    %38 = vector.broadcast %37 : vector<1x512xf32> to vector<8x512xf32>
    %39 = arith.addf %36, %38 : vector<8x512xf32>
    %cst_21 = arith.constant 0.000000e+00 : f32
    %40 = vector.broadcast %cst_21 : f32 to vector<8x512xf32>
    %41 = arith.cmpf ogt, %39, %40 : vector<8x512xf32>
    %cst_22 = arith.constant 2.000000e-01 : f32
    %42 = vector.broadcast %cst_22 : f32 to vector<8x512xf32>
    %43 = arith.mulf %42, %39 : vector<8x512xf32>
    %44 = arith.select %41, %39, %43 : vector<8x512xi1>, vector<8x512xf32>
    %45 = arith.truncf %44 : vector<8x512xf32> to vector<8x512xbf16>
    %c768 = arith.constant 768 : index
    %c0_23 = arith.constant 0 : index
    %46 = vector.load %arg3[%c768, %c0_23] : memref<2560x256xbf16, #tpu.memory_space<vmem>>, vector<512x256xbf16>
    %cst_24 = arith.constant dense<0.000000e+00> : vector<8x256xf32>
    %47 = tpu.matmul %45, %46, %cst_24 {dimension_numbers = #tpu.dot_dimension_numbers<[1], [0], [0], [1], [0, 0, 1, 1], [], []>} : vector<8x512xbf16>, vector<512x256xbf16>, vector<8x256xf32> -> vector<8x256xf32>
    %c4 = arith.constant 4 : index
    %c0_25 = arith.constant 0 : index
    %48 = vector.load %arg5[%c4, %c0_25] : memref<10x512xf32, #tpu.memory_space<vmem>>, vector<1x256xf32>
    %49 = vector.broadcast %48 : vector<1x256xf32> to vector<8x256xf32>
    %50 = arith.addf %47, %49 : vector<8x256xf32>
    %c0_26 = arith.constant 0 : index
    %c0_27 = arith.constant 0 : index
    %51 = vector.load %arg6[%c0_26, %c0_27] : memref<8x512xf32, #tpu.memory_space<vmem>>, vector<8x256xf32>
    tpu.vector_store %arg6[%c0_26, %c0_27], %50 {strides = array<i32>} : memref<8x512xf32, #tpu.memory_space<vmem>>, vector<8x256xf32>,
    %c0_28 = arith.constant 0 : index
    %c0_29 = arith.constant 0 : index
    %52 = vector.load %arg2[%c0_28, %c0_29] : memref<8x512xf32, #tpu.memory_space<vmem>>, vector<8x512xf32>
    %53 = arith.truncf %52 : vector<8x512xf32> to vector<8x512xbf16>
    %c256_30 = arith.constant 256 : index
    %c0_31 = arith.constant 0 : index
    %54 = vector.load %arg4[%c256_30, %c0_31] : memref<1024x512xbf16, #tpu.memory_space<vmem>>, vector<512x512xbf16>
    %cst_32 = arith.constant dense<0.000000e+00> : vector<8x512xf32>
    %55 = tpu.matmul %53, %54, %cst_32 {dimension_numbers = #tpu.dot_dimension_numbers<[1], [0], [0], [1], [0, 0, 1, 1], [], []>} : vector<8x512xbf16>, vector<512x512xbf16>, vector<8x512xf32> -> vector<8x512xf32>
    %c5 = arith.constant 5 : index
    %c0_33 = arith.constant 0 : index
    %56 = vector.load %arg5[%c5, %c0_33] : memref<10x512xf32, #tpu.memory_space<vmem>>, vector<1x512xf32>
    %57 = vector.broadcast %56 : vector<1x512xf32> to vector<8x512xf32>
    %58 = arith.addf %55, %57 : vector<8x512xf32>
    %cst_34 = arith.constant 0.000000e+00 : f32
    %59 = vector.broadcast %cst_34 : f32 to vector<8x512xf32>
    %60 = arith.cmpf ogt, %58, %59 : vector<8x512xf32>
    %cst_35 = arith.constant 2.000000e-01 : f32
    %61 = vector.broadcast %cst_35 : f32 to vector<8x512xf32>
    %62 = arith.mulf %61, %58 : vector<8x512xf32>
    %63 = arith.select %60, %58, %62 : vector<8x512xi1>, vector<8x512xf32>
    %64 = arith.truncf %63 : vector<8x512xf32> to vector<8x512xbf16>
    %c1280 = arith.constant 1280 : index
    %c0_36 = arith.constant 0 : index
    %65 = vector.load %arg3[%c1280, %c0_36] : memref<2560x256xbf16, #tpu.memory_space<vmem>>, vector<512x256xbf16>
    %cst_37 = arith.constant dense<0.000000e+00> : vector<8x256xf32>
    %66 = tpu.matmul %64, %65, %cst_37 {dimension_numbers = #tpu.dot_dimension_numbers<[1], [0], [0], [1], [0, 0, 1, 1], [], []>} : vector<8x512xbf16>, vector<512x256xbf16>, vector<8x256xf32> -> vector<8x256xf32>
    %c6 = arith.constant 6 : index
    %c0_38 = arith.constant 0 : index
    %67 = vector.load %arg5[%c6, %c0_38] : memref<10x512xf32, #tpu.memory_space<vmem>>, vector<1x256xf32>
    %68 = vector.broadcast %67 : vector<1x256xf32> to vector<8x256xf32>
    %69 = arith.addf %66, %68 : vector<8x256xf32>
    %cst_39 = arith.constant 0.000000e+00 : f32
    %70 = vector.broadcast %cst_39 : f32 to vector<8x256xf32>
    %71 = arith.cmpf ogt, %69, %70 : vector<8x256xf32>
    %cst_40 = arith.constant 2.000000e-01 : f32
    %72 = vector.broadcast %cst_40 : f32 to vector<8x256xf32>
    %73 = arith.mulf %72, %69 : vector<8x256xf32>
    %74 = arith.select %71, %69, %73 : vector<8x256xi1>, vector<8x256xf32>
    %75 = arith.truncf %74 : vector<8x256xf32> to vector<8x256xbf16>
    %c1792 = arith.constant 1792 : index
    %c0_41 = arith.constant 0 : index
    %76 = vector.load %arg3[%c1792, %c0_41] : memref<2560x256xbf16, #tpu.memory_space<vmem>>, vector<256x256xbf16>
    %cst_42 = arith.constant dense<0.000000e+00> : vector<8x256xf32>
    %77 = tpu.matmul %75, %76, %cst_42 {dimension_numbers = #tpu.dot_dimension_numbers<[1], [0], [0], [1], [0, 0, 1, 1], [], []>} : vector<8x256xbf16>, vector<256x256xbf16>, vector<8x256xf32> -> vector<8x256xf32>
    %c7 = arith.constant 7 : index
    %c0_43 = arith.constant 0 : index
    %78 = vector.load %arg5[%c7, %c0_43] : memref<10x512xf32, #tpu.memory_space<vmem>>, vector<1x256xf32>
    %79 = vector.broadcast %78 : vector<1x256xf32> to vector<8x256xf32>
    %80 = arith.addf %77, %79 : vector<8x256xf32>
    %cst_44 = arith.constant 0.000000e+00 : f32
    %81 = vector.broadcast %cst_44 : f32 to vector<8x256xf32>
    %82 = arith.cmpf ogt, %80, %81 : vector<8x256xf32>
    %cst_45 = arith.constant 2.000000e-01 : f32
    %83 = vector.broadcast %cst_45 : f32 to vector<8x256xf32>
    %84 = arith.mulf %83, %80 : vector<8x256xf32>
    %85 = arith.select %82, %80, %84 : vector<8x256xi1>, vector<8x256xf32>
    %86 = arith.truncf %85 : vector<8x256xf32> to vector<8x256xbf16>
    %c768_46 = arith.constant 768 : index
    %c0_47 = arith.constant 0 : index
    %87 = vector.load %arg4[%c768_46, %c0_47] : memref<1024x512xbf16, #tpu.memory_space<vmem>>, vector<256x512xbf16>
    %cst_48 = arith.constant dense<0.000000e+00> : vector<8x512xf32>
    %88 = tpu.matmul %86, %87, %cst_48 {dimension_numbers = #tpu.dot_dimension_numbers<[1], [0], [0], [1], [0, 0, 1, 1], [], []>} : vector<8x256xbf16>, vector<256x512xbf16>, vector<8x512xf32> -> vector<8x512xf32>
    %c8 = arith.constant 8 : index
    %c0_49 = arith.constant 0 : index
    %89 = vector.load %arg5[%c8, %c0_49] : memref<10x512xf32, #tpu.memory_space<vmem>>, vector<1x512xf32>
    %90 = vector.broadcast %89 : vector<1x512xf32> to vector<8x512xf32>
    %91 = arith.addf %88, %90 : vector<8x512xf32>
    %cst_50 = arith.constant 0.000000e+00 : f32
    %92 = vector.broadcast %cst_50 : f32 to vector<8x512xf32>
    %93 = arith.cmpf ogt, %91, %92 : vector<8x512xf32>
    %cst_51 = arith.constant 2.000000e-01 : f32
    %94 = vector.broadcast %cst_51 : f32 to vector<8x512xf32>
    %95 = arith.mulf %94, %91 : vector<8x512xf32>
    %96 = arith.select %93, %91, %95 : vector<8x512xi1>, vector<8x512xf32>
    %97 = arith.truncf %96 : vector<8x512xf32> to vector<8x512xbf16>
    %c2048 = arith.constant 2048 : index
    %c0_52 = arith.constant 0 : index
    %98 = vector.load %arg3[%c2048, %c0_52] : memref<2560x256xbf16, #tpu.memory_space<vmem>>, vector<512x256xbf16>
    %cst_53 = arith.constant dense<0.000000e+00> : vector<8x256xf32>
    %99 = tpu.matmul %97, %98, %cst_53 {dimension_numbers = #tpu.dot_dimension_numbers<[1], [0], [0], [1], [0, 0, 1, 1], [], []>} : vector<8x512xbf16>, vector<512x256xbf16>, vector<8x256xf32> -> vector<8x256xf32>
    %c9 = arith.constant 9 : index
    %c0_54 = arith.constant 0 : index
    %100 = vector.load %arg5[%c9, %c0_54] : memref<10x512xf32, #tpu.memory_space<vmem>>, vector<1x256xf32>
    %101 = vector.broadcast %100 : vector<1x256xf32> to vector<8x256xf32>
    %102 = arith.addf %99, %101 : vector<8x256xf32>
    %c0_55 = arith.constant 0 : index
    %c256_56 = arith.constant 256 : index
    %103 = vector.load %arg6[%c0_55, %c256_56] : memref<8x512xf32, #tpu.memory_space<vmem>>, vector<8x256xf32>
    tpu.vector_store %arg6[%c0_55, %c256_56], %102 {strides = array<i32>} : memref<8x512xf32, #tpu.memory_space<vmem>>, vector<8x256xf32>,
    return
  }
  func.func @transform_0(%arg0: i32) -> (i32, i32) {
    %c0_i32 = arith.constant 0 : i32
    %c0_i32_0 = arith.constant 0 : i32
    return %arg0, %c0_i32 : i32, i32
  }
  func.func @transform_1(%arg0: i32) -> (i32, i32) {
    %c0_i32 = arith.constant 0 : i32
    %c0_i32_0 = arith.constant 0 : i32
    return %arg0, %c0_i32 : i32, i32
  }
  func.func @transform_2(%arg0: i32) -> (i32, i32) {
    %c0_i32 = arith.constant 0 : i32
    %c0_i32_0 = arith.constant 0 : i32
    %c0_i32_1 = arith.constant 0 : i32
    return %c0_i32, %c0_i32_0 : i32, i32
  }
  func.func @transform_3(%arg0: i32) -> (i32, i32) {
    %c0_i32 = arith.constant 0 : i32
    %c0_i32_0 = arith.constant 0 : i32
    %c0_i32_1 = arith.constant 0 : i32
    return %c0_i32, %c0_i32_0 : i32, i32
  }
  func.func @transform_4(%arg0: i32) -> (i32, i32) {
    %c0_i32 = arith.constant 0 : i32
    %c0_i32_0 = arith.constant 0 : i32
    %c0_i32_1 = arith.constant 0 : i32
    return %c0_i32, %c0_i32_0 : i32, i32
  }
  func.func @transform_5(%arg0: i32) -> (i32, i32) {
    %c0_i32 = arith.constant 0 : i32
    %c0_i32_0 = arith.constant 0 : i32
    return %arg0, %c0_i32 : i32, i32
  }
}

</mosaic_0001>

<bundles_post_ra>
// kernel: latent2code_forward.1
= control target key start
LH: loop header
LB: loop body
LE: loop exit
PB: predicated region body
PF: predicated region fallthrough
CT: control target
= control target key end

     0   :  { %10 = vsyncpa [#allocation3], 0  ;;  %s6258_s0 = inlined_call_operand.vmem [shape: f32[8,256], index: 0, kind: input, shape index: {}]   ;;  %s6259_s1 = inlined_call_operand.vmem [shape: f32[8,512], index: 1, kind: input, shape index: {}]   ;;  %s6260_s2 = inlined_call_operand.hbm [shape: bf16[2560,256], index: 2, kind: input, shape index: {}]   ;;  %s6261_s3 = inlined_call_operand.hbm [shape: bf16[1024,512], index: 3, kind: input, shape index: {}]   ;;  %s6262_s4 = inlined_call_operand.hbm [shape: f32[10,512], index: 4, kind: input, shape index: {}]   ;;  %s6263_s5 = inlined_call_operand.vmem [shape: f32[8,512], index: 5, kind: output, shape index: {}]  }
   0x1   :  { %11 = vsyncpa [#allocation5], 0  ;;  %s6073_s18 = smov [#allocation4]   ;;  %s6003_s22 = scalar_lea.hbm %s6261_s3, 32768 }
   0x2   :  { %s33_s19 = sshll.u32 %s6073_s18, 4  ;;  %p6004_p0 = scmp.ne.s32.totalorder %s6261_s3, %s6003_s22  ;;  %s34_s19 = int_to_ptr.vmem [resolvable:$true] %s33_s19 }
   0x3   :  { %p6007_p1 = scmp.lt.u32.totalorder %s6003_s22, %s6261_s3 }
   0x5   :  { %p6009_p2 = pnand %p6007_p1, %p6004_p0 }
   0x7   :  { %6012 = shalt.err (!%p6009_p2)
}
   0x8   :  { %s6013_s27 = scalar_lea.vmem %s34_s19, 32768  ;;  %p6018_p4 = scmp.lt.s32.totalorder %s34_s19, %s34_s19 }
   0x9   :  { %p6014_p3 = scmp.ne.s32.totalorder %s34_s19, %s6013_s27  ;;  %p6019_p5 = scmp.lt.s32.totalorder %s6013_s27, %s6013_s27 }
   0xb   :  { %p6020_p6 = por %p6019_p5, %p6018_p4 }
   0xd   :  { %p6021_p7 = pnand %p6020_p6, %p6014_p3 }
   0xf   :  { %6024 = shalt.err (!%p6021_p7)
}
  0x10   :  { %s6074_s28 = smov 256   ;;  %s6075_s29 = smov 16  }
  0x11   :  { %39 = dma.hbm_to_vmem [thread:$0]  %s6261_s3, 32768, %s34_s19, [#allocation5], %s6074_s28, %s6074_s28, %s6075_s29  }
  0x12   :  { %s6076_s7 = smov [#allocation2]   ;;  %s6025_s11 = scalar_lea.hbm %s6260_s2, 40960 }
  0x13   :  { %s21_s8 = sshll.u32 %s6076_s7, 4  ;;  %p6026_p8 = scmp.ne.s32.totalorder %s6260_s2, %s6025_s11  ;;  %s22_s8 = int_to_ptr.vmem [resolvable:$true] %s21_s8 }
  0x14   :  { %p6029_p9 = scmp.lt.u32.totalorder %s6025_s11, %s6260_s2 }
  0x16   :  { %p6031_p10 = pnand %p6029_p9, %p6026_p8 }
  0x18   :  { %6034 = shalt.err (!%p6031_p10)
}
  0x19   :  { %s6035_s16 = scalar_lea.vmem %s22_s8, 40960  ;;  %p6040_p12 = scmp.lt.s32.totalorder %s22_s8, %s22_s8 }
  0x1a   :  { %p6036_p11 = scmp.ne.s32.totalorder %s22_s8, %s6035_s16  ;;  %p6041_p13 = scmp.lt.s32.totalorder %s6035_s16, %s6035_s16 }
  0x1c   :  { %p6042_p0 = por %p6041_p13, %p6040_p12 }
  0x1e   :  { %p6043_p1 = pnand %p6042_p0, %p6036_p11 }
  0x20   :  { %6046 = shalt.err (!%p6043_p1)
}
  0x21   :  { %s6077_s3 = smov 128   ;;  %s6078_s17 = smov 8  }
  0x22   :  { %27 = dma.hbm_to_vmem [thread:$0]  %s6260_s2, 40960, %s22_s8, [#allocation3], %s6077_s3, %s6077_s3, %s6078_s17  }
  0x23   :  { %s6079_s20 = smov [#allocation6]   ;;  %s6047_s24 = scalar_lea.hbm %s6262_s4, 1024 }
  0x24   :  { %s45_s21 = sshll.u32 %s6079_s20, 4  ;;  %p6048_p2 = scmp.ne.s32.totalorder %s6262_s4, %s6047_s24  ;;  %s46_s21 = int_to_ptr.vmem [resolvable:$true] %s45_s21 }
  0x25   :  { %p6051_p3 = scmp.lt.u32.totalorder %s6047_s24, %s6262_s4 }
  0x27   :  { %p6053_p4 = pnand %p6051_p3, %p6048_p2 }
  0x29   :  { %6056 = shalt.err (!%p6053_p4)
}
  0x2a   :  { %s6057_s29 = scalar_lea.vmem %s46_s21, 1024  ;;  %p6062_p6 = scmp.lt.s32.totalorder %s46_s21, %s46_s21 }
  0x2b   :  { %p6058_p5 = scmp.ne.s32.totalorder %s46_s21, %s6057_s29  ;;  %p6063_p7 = scmp.lt.s32.totalorder %s6057_s29, %s6057_s29 }
  0x2d   :  { %p6064_p8 = por %p6063_p7, %p6062_p6 }
  0x2f   :  { %p6065_p9 = pnand %p6064_p8, %p6058_p5 }
  0x31   :  { %6068 = shalt.err (!%p6065_p9)
}
  0x32   :  { %s6080_s2 = smov 512   ;;  %s6081_s30 = smov 32  }
  0x33   :  { %51 = dma.hbm_to_vmem [thread:$0]  %s6262_s4, 1024, %s46_s21, [#allocation5], %s6080_s2, %s6080_s2, %s6081_s30  }
  0x34   :  { %6069 = dma.done.wait [#allocation3], 40960  }
  0x35   :  { %6070 = vsyncadd [#allocation3], 4294926336 }
  0x36   :  { %6071 = dma.done.wait [#allocation5], 33792  }
  0x37   :  { %6072 = vsyncadd [#allocation5], 4294933504  ;;  %v5139_v0 = vld [vmem:[#allocation2 + $0x4] ss:$8 sps:$4 sm:$0xff]   ;;  %v5141_v1 = vld [vmem:[#allocation2] ss:$8 sps:$4 sm:$0xff]  }
  0x38   :  { %269 = vmatprep.subr.bf16.mxu1 %v5139_v0  ;;  %v5142_v2 = vld [vmem:[#allocation2 + $0x14] ss:$8 sps:$4 sm:$0xff]   ;;  %v5144_v3 = vld [vmem:[#allocation2 + $0x10] ss:$8 sps:$4 sm:$0xff]   ;;  %v5145_v4 = vld [vmem:[#allocation2 + $0x24] ss:$8 sps:$4 sm:$0xff]  }
  0x39   :  { %270 = vmatpush1.bf16.msra.mxu1 %v5141_v1  ;;  %v5147_v5 = vld [vmem:[#allocation2 + $0x20] ss:$8 sps:$4 sm:$0xff]   ;;  %v5148_v6 = vld [vmem:[#allocation2 + $0x34] ss:$8 sps:$4 sm:$0xff]   ;;  %v5150_v7 = vld [vmem:[#allocation2 + $0x30] ss:$8 sps:$4 sm:$0xff]  }
  0x3a   :  { %271 = vmatprep.subr.bf16.mxu1 %v5142_v2  ;;  %v5151_v8 = vld [vmem:[#allocation2 + $0x44] ss:$8 sps:$4 sm:$0xff]   ;;  %v5153_v9 = vld [vmem:[#allocation2 + $0x40] ss:$8 sps:$4 sm:$0xff]   ;;  %v5154_v10 = vld [vmem:[#allocation2 + $0x54] ss:$8 sps:$4 sm:$0xff]  }
  0x3b   :  { %v5156_v11 = vld [vmem:[#allocation2 + $0x50] ss:$8 sps:$4 sm:$0xff]   ;;  %v5157_v12 = vld [vmem:[#allocation2 + $0x64] ss:$8 sps:$4 sm:$0xff]   ;;  %v5159_v15 = vld [vmem:[#allocation2 + $0x60] ss:$8 sps:$4 sm:$0xff]  }
  0x3c   :  { %v62_v13 = vld [vmem:[%s6258_s0 + $0x8] sm:$0xff]  ;;  %v5160_v16 = vld [vmem:[#allocation2 + $0x74] ss:$8 sps:$4 sm:$0xff]   ;;  %v5162_v17 = vld [vmem:[#allocation2 + $0x70] ss:$8 sps:$4 sm:$0xff]  }
  0x3d   :  { %272 = vmatpush1.bf16.msra.mxu1 %v5144_v3  ;;  %v64_v14 = vpack.c.bf16 %v62_v13, %v62_v13  ;;  %v5163_v18 = vld [vmem:[#allocation2 + $0x84] ss:$8 sps:$4 sm:$0xff]   ;;  %v5165_v19 = vld [vmem:[#allocation2 + $0x80] ss:$8 sps:$4 sm:$0xff]   ;;  %v5166_v20 = vld [vmem:[#allocation2 + $0x94] ss:$8 sps:$4 sm:$0xff]  }
  0x3e   :  { %273 = vmatprep.subr.bf16.mxu1 %v5145_v4  ;;  %v5168_v21 = vld [vmem:[#allocation2 + $0x90] ss:$8 sps:$4 sm:$0xff]   ;;  %v5169_v22 = vld [vmem:[#allocation2 + $0xa4] ss:$8 sps:$4 sm:$0xff]   ;;  %v5171_v23 = vld [vmem:[#allocation2 + $0xa0] ss:$8 sps:$4 sm:$0xff]  }
  0x3f   :  { %301 = vmatprep.mubr.bf16.mxu1 %v64_v14  ;;  %v5172_v24 = vld [vmem:[#allocation2 + $0xb4] ss:$8 sps:$4 sm:$0xff]   ;;  %v5174_v25 = vld [vmem:[#allocation2 + $0xb0] ss:$8 sps:$4 sm:$0xff]   ;;  %v5175_v26 = vld [vmem:[#allocation2 + $0xc4] ss:$8 sps:$4 sm:$0xff]  }
  0x40   :  { %v5177_v27 = vld [vmem:[#allocation2 + $0xc0] ss:$8 sps:$4 sm:$0xff]   ;;  %v5178_v28 = vld [vmem:[#allocation2 + $0xd4] ss:$8 sps:$4 sm:$0xff]   ;;  %v5180_v29 = vld [vmem:[#allocation2 + $0xd0] ss:$8 sps:$4 sm:$0xff]  }
  0x41   :  { %274 = vmatpush1.bf16.msra.mxu1 %v5147_v5  ;;  %v5181_v30 = vld [vmem:[#allocation2 + $0xe4] ss:$8 sps:$4 sm:$0xff]   ;;  %v5183_v31 = vld [vmem:[#allocation2 + $0xe0] ss:$8 sps:$4 sm:$0xff]   ;;  %v5184_v32 = vld [vmem:[#allocation2 + $0xf4] ss:$8 sps:$4 sm:$0xff]  }
  0x42   :  { %275 = vmatprep.subr.bf16.mxu1 %v5148_v6  ;;  %v5186_v33 = vld [vmem:[#allocation2 + $0xf0] ss:$8 sps:$4 sm:$0xff]   ;;  %v61_v34 = vld [vmem:[%s6258_s0] sm:$0xff]  ;;  %v5192_v38 = vld [vmem:[#allocation2 + $0x114] ss:$8 sps:$4 sm:$0xff]  }
  0x43   :  { %v5189_v35 = vld [vmem:[#allocation2 + $0x104] ss:$8 sps:$4 sm:$0xff]   ;;  %v5187_v36 = vld [vmem:[#allocation2 + $0x100] ss:$8 sps:$4 sm:$0xff]   ;;  %v63_v37 = vpack.c.bf16 %v61_v34, %v61_v34  ;;  %v5190_v39 = vld [vmem:[#allocation2 + $0x110] ss:$8 sps:$4 sm:$0xff]  }
  0x44   :  { %v5195_v40 = vld [vmem:[#allocation2 + $0x124] ss:$8 sps:$4 sm:$0xff]   ;;  %v5193_v41 = vld [vmem:[#allocation2 + $0x120] ss:$8 sps:$4 sm:$0xff]   ;;  %v5198_v42 = vld [vmem:[#allocation2 + $0x134] ss:$8 sps:$4 sm:$0xff]  }
  0x45   :  { %276 = vmatpush1.bf16.msra.mxu1 %v5150_v7  ;;  %v5196_v43 = vld [vmem:[#allocation2 + $0x130] ss:$8 sps:$4 sm:$0xff]   ;;  %v5201_v44 = vld [vmem:[#allocation2 + $0x144] ss:$8 sps:$4 sm:$0xff]   ;;  %v5199_v45 = vld [vmem:[#allocation2 + $0x140] ss:$8 sps:$4 sm:$0xff]  }
  0x46   :  { %277 = vmatprep.subr.bf16.mxu1 %v5151_v8  ;;  %v5204_v46 = vld [vmem:[#allocation2 + $0x154] ss:$8 sps:$4 sm:$0xff]   ;;  %v5202_v47 = vld [vmem:[#allocation2 + $0x150] ss:$8 sps:$4 sm:$0xff]   ;;  %v5207_v48 = vld [vmem:[#allocation2 + $0x164] ss:$8 sps:$4 sm:$0xff]  }
  0x47   :  { %v5205_v49 = vld [vmem:[#allocation2 + $0x160] ss:$8 sps:$4 sm:$0xff]   ;;  %v5210_v50 = vld [vmem:[#allocation2 + $0x174] ss:$8 sps:$4 sm:$0xff]   ;;  %v5208_v51 = vld [vmem:[#allocation2 + $0x170] ss:$8 sps:$4 sm:$0xff]  }
  0x48   :  { %v5213_v52 = vld [vmem:[#allocation2 + $0x184] ss:$8 sps:$4 sm:$0xff]   ;;  %v5211_v53 = vld [vmem:[#allocation2 + $0x180] ss:$8 sps:$4 sm:$0xff]   ;;  %v5216_v54 = vld [vmem:[#allocation2 + $0x194] ss:$8 sps:$4 sm:$0xff]  }
  0x49   :  { %278 = vmatpush1.bf16.msra.mxu1 %v5153_v9  ;;  %v5214_v55 = vld [vmem:[#allocation2 + $0x190] ss:$8 sps:$4 sm:$0xff]   ;;  %v5219_v56 = vld [vmem:[#allocation2 + $0x1a4] ss:$8 sps:$4 sm:$0xff]   ;;  %v5217_v57 = vld [vmem:[#allocation2 + $0x1a0] ss:$8 sps:$4 sm:$0xff]  }
  0x4a   :  { %279 = vmatprep.subr.bf16.mxu1 %v5154_v10  ;;  %v5222_v58 = vld [vmem:[#allocation2 + $0x1b4] ss:$8 sps:$4 sm:$0xff]   ;;  %v5220_v59 = vld [vmem:[#allocation2 + $0x1b0] ss:$8 sps:$4 sm:$0xff]   ;;  %v5225_v60 = vld [vmem:[#allocation2 + $0x1c4] ss:$8 sps:$4 sm:$0xff]  }
  0x4b   :  { %v5223_v61 = vld [vmem:[#allocation2 + $0x1c0] ss:$8 sps:$4 sm:$0xff]   ;;  %v5228_v62 = vld [vmem:[#allocation2 + $0x1d4] ss:$8 sps:$4 sm:$0xff]   ;;  %v5226_v63 = vld [vmem:[#allocation2 + $0x1d0] ss:$8 sps:$4 sm:$0xff]  }
  0x4c   :  { %v5231_v0 = vld [vmem:[#allocation2 + $0x1e4] ss:$8 sps:$4 sm:$0xff]   ;;  %v5229_v1 = vld [vmem:[#allocation2 + $0x1e0] ss:$8 sps:$4 sm:$0xff]   ;;  %v5234_v2 = vld [vmem:[#allocation2 + $0x1f4] ss:$8 sps:$4 sm:$0xff]  }
  0x4d   :  { %280 = vmatpush1.bf16.msra.mxu1 %v5156_v11  ;;  %v5232_v3 = vld [vmem:[#allocation2 + $0x1f0] ss:$8 sps:$4 sm:$0xff]   ;;  %v5235_v4 = vld [vmem:[#allocation2 + $0x204] ss:$8 sps:$4 sm:$0xff]   ;;  %v5237_v5 = vld [vmem:[#allocation2 + $0x200] ss:$8 sps:$4 sm:$0xff]  }
  0x4e   :  { %281 = vmatprep.subr.bf16.mxu1 %v5157_v12  ;;  %v5238_v6 = vld [vmem:[#allocation2 + $0x214] ss:$8 sps:$4 sm:$0xff]   ;;  %777 = vmatprep.subr.bf16.mxu0 %v5235_v4  ;;  %v5240_v7 = vld [vmem:[#allocation2 + $0x210] ss:$8 sps:$4 sm:$0xff]   ;;  %v5241_v8 = vld [vmem:[#allocation2 + $0x224] ss:$8 sps:$4 sm:$0xff]  }
  0x4f   :  { %778 = vmatpush1.bf16.msra.mxu0 %v5237_v5  ;;  %v5243_v9 = vld [vmem:[#allocation2 + $0x220] ss:$8 sps:$4 sm:$0xff]   ;;  %v5244_v10 = vld [vmem:[#allocation2 + $0x234] ss:$8 sps:$4 sm:$0xff]   ;;  %v5246_v11 = vld [vmem:[#allocation2 + $0x230] ss:$8 sps:$4 sm:$0xff]  }
  0x50   :  { %779 = vmatprep.subr.bf16.mxu0 %v5238_v6  ;;  %v5247_v12 = vld [vmem:[#allocation2 + $0x244] ss:$8 sps:$4 sm:$0xff]   ;;  %v5249_v13 = vld [vmem:[#allocation2 + $0x240] ss:$8 sps:$4 sm:$0xff]   ;;  %v5250_v14 = vld [vmem:[#allocation2 + $0x254] ss:$8 sps:$4 sm:$0xff]  }
  0x51   :  { %282 = vmatpush1.bf16.msra.mxu1 %v5159_v15  ;;  %v5252_v15 = vld [vmem:[#allocation2 + $0x250] ss:$8 sps:$4 sm:$0xff]   ;;  %v5321_v4 = vld [vmem:[#allocation4 + $0xc4] ss:$16 sps:$4 sm:$0xff]  }
  0x52   :  { %283 = vmatprep.subr.bf16.mxu1 %v5160_v16  ;;  %v5253_v16 = vld [vmem:[#allocation2 + $0x264] ss:$8 sps:$4 sm:$0xff]   ;;  %v5319_v5 = vld [vmem:[#allocation4 + $0xc0] ss:$16 sps:$4 sm:$0xff]  }
  0x53   :  { %780 = vmatpush1.bf16.msra.mxu0 %v5240_v7  ;;  %v5327_v6 = vld [vmem:[#allocation4 + $0xe4] ss:$16 sps:$4 sm:$0xff]   ;;  %v5325_v7 = vld [vmem:[#allocation4 + $0xe0] ss:$16 sps:$4 sm:$0xff]  }
  0x54   :  { %781 = vmatprep.subr.bf16.mxu0 %v5241_v8  ;;  %v5333_v8 = vld [vmem:[#allocation4 + $0x104] ss:$16 sps:$4 sm:$0xff]  }
  0x55   :  { %284 = vmatpush1.bf16.msra.mxu1 %v5162_v17  ;;  %v5255_v17 = vld [vmem:[#allocation2 + $0x260] ss:$8 sps:$4 sm:$0xff]  }
  0x56   :  { %285 = vmatprep.subr.bf16.mxu1 %v5163_v18  ;;  %v5256_v18 = vld [vmem:[#allocation2 + $0x274] ss:$8 sps:$4 sm:$0xff]  }
  0x57   :  { %782 = vmatpush1.bf16.msra.mxu0 %v5243_v9  ;;  %v5331_v9 = vld [vmem:[#allocation4 + $0x100] ss:$16 sps:$4 sm:$0xff]  }
  0x58   :  { %783 = vmatprep.subr.bf16.mxu0 %v5244_v10  ;;  %v5339_v10 = vld [vmem:[#allocation4 + $0x124] ss:$16 sps:$4 sm:$0xff]  }
  0x59   :  { %286 = vmatpush1.bf16.msra.mxu1 %v5165_v19  ;;  %v5258_v19 = vld [vmem:[#allocation2 + $0x270] ss:$8 sps:$4 sm:$0xff]  }
  0x5a   :  { %287 = vmatprep.subr.bf16.mxu1 %v5166_v20  ;;  %v5259_v20 = vld [vmem:[#allocation2 + $0x284] ss:$8 sps:$4 sm:$0xff]  }
  0x5b   :  { %784 = vmatpush1.bf16.msra.mxu0 %v5246_v11  ;;  %v5337_v11 = vld [vmem:[#allocation4 + $0x120] ss:$16 sps:$4 sm:$0xff]  }
  0x5c   :  { %785 = vmatprep.subr.bf16.mxu0 %v5247_v12  ;;  %v5345_v12 = vld [vmem:[#allocation4 + $0x144] ss:$16 sps:$4 sm:$0xff]  }
  0x5d   :  { %288 = vmatpush1.bf16.msra.mxu1 %v5168_v21  ;;  %v5261_v21 = vld [vmem:[#allocation2 + $0x280] ss:$8 sps:$4 sm:$0xff]  }
  0x5e   :  { %289 = vmatprep.subr.bf16.mxu1 %v5169_v22  ;;  %v5262_v22 = vld [vmem:[#allocation2 + $0x294] ss:$8 sps:$4 sm:$0xff]  }
  0x5f   :  { %786 = vmatpush1.bf16.msra.mxu0 %v5249_v13  ;;  %v5343_v13 = vld [vmem:[#allocation4 + $0x140] ss:$16 sps:$4 sm:$0xff]  }
  0x60   :  { %787 = vmatprep.subr.bf16.mxu0 %v5250_v14  ;;  %v5351_v14 = vld [vmem:[#allocation4 + $0x164] ss:$16 sps:$4 sm:$0xff]  }
  0x61   :  { %290 = vmatpush1.bf16.msra.mxu1 %v5171_v23  ;;  %v5264_v23 = vld [vmem:[#allocation2 + $0x290] ss:$8 sps:$4 sm:$0xff]  }
  0x62   :  { %291 = vmatprep.subr.bf16.mxu1 %v5172_v24  ;;  %v5265_v24 = vld [vmem:[#allocation2 + $0x2a4] ss:$8 sps:$4 sm:$0xff]  }
  0x63   :  { %788 = vmatpush1.bf16.msra.mxu0 %v5252_v15  ;;  %v5349_v15 = vld [vmem:[#allocation4 + $0x160] ss:$16 sps:$4 sm:$0xff]  }
  0x64   :  { %789 = vmatprep.subr.bf16.mxu0 %v5253_v16  ;;  %v5357_v16 = vld [vmem:[#allocation4 + $0x184] ss:$16 sps:$4 sm:$0xff]  }
  0x65   :  { %292 = vmatpush1.bf16.msra.mxu1 %v5174_v25  ;;  %v5267_v25 = vld [vmem:[#allocation2 + $0x2a0] ss:$8 sps:$4 sm:$0xff]  }
  0x66   :  { %293 = vmatprep.subr.bf16.mxu1 %v5175_v26  ;;  %v5268_v26 = vld [vmem:[#allocation2 + $0x2b4] ss:$8 sps:$4 sm:$0xff]  }
  0x67   :  { %790 = vmatpush1.bf16.msra.mxu0 %v5255_v17  ;;  %v5355_v17 = vld [vmem:[#allocation4 + $0x180] ss:$16 sps:$4 sm:$0xff]  }
  0x68   :  { %791 = vmatprep.subr.bf16.mxu0 %v5256_v18  ;;  %v5363_v18 = vld [vmem:[#allocation4 + $0x1a4] ss:$16 sps:$4 sm:$0xff]  }
  0x69   :  { %294 = vmatpush1.bf16.msra.mxu1 %v5177_v27  ;;  %v5270_v27 = vld [vmem:[#allocation2 + $0x2b0] ss:$8 sps:$4 sm:$0xff]  }
  0x6a   :  { %295 = vmatprep.subr.bf16.mxu1 %v5178_v28  ;;  %v5271_v28 = vld [vmem:[#allocation2 + $0x2c4] ss:$8 sps:$4 sm:$0xff]  }
  0x6b   :  { %792 = vmatpush1.bf16.msra.mxu0 %v5258_v19  ;;  %v5361_v19 = vld [vmem:[#allocation4 + $0x1a0] ss:$16 sps:$4 sm:$0xff]  }
  0x6c   :  { %793 = vmatprep.subr.bf16.mxu0 %v5259_v20  ;;  %v351_v20 = vld [vmem:[#allocation6 + $0x1] ss:$8 sm:$0x3] }
  0x6d   :  { %296 = vmatpush1.bf16.msra.mxu1 %v5180_v29  ;;  %v5273_v29 = vld [vmem:[#allocation2 + $0x2c0] ss:$8 sps:$4 sm:$0xff]  }
  0x6e   :  { %297 = vmatprep.subr.bf16.mxu1 %v5181_v30  ;;  %v5274_v30 = vld [vmem:[#allocation2 + $0x2d4] ss:$8 sps:$4 sm:$0xff]  }
  0x6f   :  { %794 = vmatpush1.bf16.msra.mxu0 %v5261_v21 }
  0x70   :  { %795 = vmatprep.subr.bf16.mxu0 %v5262_v22 }
  0x71   :  { %298 = vmatpush1.bf16.msra.mxu1 %v5183_v31  ;;  %v5276_v31 = vld [vmem:[#allocation2 + $0x2d0] ss:$8 sps:$4 sm:$0xff]  }
  0x72   :  { %299 = vmatprep.subr.bf16.mxu1 %v5184_v32  ;;  %v99_v32 = vlaneseq }
  0x73   :  { %796 = vmatpush1.bf16.msra.mxu0 %v5264_v23 }
  0x74   :  { %797 = vmatprep.subr.bf16.mxu0 %v5265_v24 }
  0x75   :  { %300 = vmatpush1.bf16.msra.mxu1 %v5186_v33  ;;  %v6154_v33 = vshrl.u32 %v99_v32, 7 }
  0x76   :  { %523 = vmatprep.subr.bf16.mxu1 %v5189_v35  ;;  %v97_v35 = vld [vmem:[#allocation6] ss:$8 sm:$0x3] }
  0x77   :  { %798 = vmatpush1.bf16.msra.mxu0 %v5267_v25  ;;  %v6157_v34 = vsub.s32 0, %v6154_v33 }
  0x78   :  { %302 = vmatmul.mubr.bf16.vlgmr.msra.gmra.mrb[0].mxu1 %v63_v37  ;;  %799 = vmatprep.subr.bf16.mxu0 %v5268_v26 }
  0x79   :  { %524 = vmatpush1.bf16.msra.mxu1 %v5187_v36  ;;  %v6160_v36 = vsub.s32 1, %v6154_v33  ;;  %v102_v37 = vrot.slane %v97_v35, %v6157_v34  ;;  %v356_v21 = vrot.slane %v351_v20, %v6157_v34 }
  0x7a   :  { %525 = vmatprep.subr.bf16.mxu1 %v5192_v38 }
  0x7b   :  { %800 = vmatpush1.bf16.msra.mxu0 %v5270_v27  ;;  %v106_v38 = vrot.slane %v97_v35, %v6160_v36  ;;  %v360_v22 = vrot.slane %v351_v20, %v6160_v36 }
  0x7c   :  { %801 = vmatprep.subr.bf16.mxu0 %v5271_v28 }
  0x7d   :  { %526 = vmatpush1.bf16.msra.mxu1 %v5190_v39 }
  0x7e   :  { %527 = vmatprep.subr.bf16.mxu1 %v5195_v40 }
  0x7f   :  { %802 = vmatpush1.bf16.msra.mxu0 %v5273_v29 }
  0x80   :  { %803 = vmatprep.subr.bf16.mxu0 %v5274_v30 }
  0x81   :  { %528 = vmatpush1.bf16.msra.mxu1 %v5193_v41 }
  0x82   :  { %529 = vmatprep.subr.bf16.mxu1 %v5198_v42 }
  0x83   :  { %804 = vmatpush1.bf16.msra.mxu0 %v5276_v31 }
  0x85   :  { %530 = vmatpush1.bf16.msra.mxu1 %v5196_v43 }
  0x86   :  { %531 = vmatprep.subr.bf16.mxu1 %v5201_v44 }
  0x89   :  { %532 = vmatpush1.bf16.msra.mxu1 %v5199_v45 }
  0x8a   :  { %533 = vmatprep.subr.bf16.mxu1 %v5204_v46 }
  0x8d   :  { %534 = vmatpush1.bf16.msra.mxu1 %v5202_v47 }
  0x8e   :  { %535 = vmatprep.subr.bf16.mxu1 %v5207_v48 }
  0x91   :  { %536 = vmatpush1.bf16.msra.mxu1 %v5205_v49 }
  0x92   :  { %537 = vmatprep.subr.bf16.mxu1 %v5210_v50 }
  0x95   :  { %538 = vmatpush1.bf16.msra.mxu1 %v5208_v51  ;;  %v5277_v51 = vld [vmem:[#allocation2 + $0x2e4] ss:$8 sps:$4 sm:$0xff]  }
  0x96   :  { %539 = vmatprep.subr.bf16.mxu1 %v5213_v52  ;;  %v5279_v52 = vld [vmem:[#allocation2 + $0x2e0] ss:$8 sps:$4 sm:$0xff]   ;;  %805 = vmatprep.subr.bf16.mxu0 %v5277_v51  ;;  %v5330_v51 = vld [vmem:[#allocation4 + $0xec] ss:$16 sps:$4 sm:$0xff]  }
  0x97   :  { %806 = vmatpush1.bf16.msra.mxu0 %v5279_v52  ;;  %v5328_v52 = vld [vmem:[#allocation4 + $0xe8] ss:$16 sps:$4 sm:$0xff]  }
  0x99   :  { %540 = vmatpush1.bf16.msra.mxu1 %v5211_v53  ;;  %v5280_v53 = vld [vmem:[#allocation2 + $0x2f4] ss:$8 sps:$4 sm:$0xff]  }
  0x9a   :  { %541 = vmatprep.subr.bf16.mxu1 %v5216_v54  ;;  %v5282_v54 = vld [vmem:[#allocation2 + $0x2f0] ss:$8 sps:$4 sm:$0xff]   ;;  %807 = vmatprep.subr.bf16.mxu0 %v5280_v53  ;;  %v5336_v53 = vld [vmem:[#allocation4 + $0x10c] ss:$16 sps:$4 sm:$0xff]  }
  0x9b   :  { %808 = vmatpush1.bf16.msra.mxu0 %v5282_v54  ;;  %v5334_v54 = vld [vmem:[#allocation4 + $0x108] ss:$16 sps:$4 sm:$0xff]  }
  0x9d   :  { %542 = vmatpush1.bf16.msra.mxu1 %v5214_v55  ;;  %v5283_v55 = vld [vmem:[#allocation4] ss:$16 sps:$4 sm:$0xff]  }
  0x9e   :  { %543 = vmatprep.subr.bf16.mxu1 %v5219_v56  ;;  %v5285_v56 = vld [vmem:[#allocation4 + $0x4] ss:$16 sps:$4 sm:$0xff]  }
  0xa1   :  { %544 = vmatpush1.bf16.msra.mxu1 %v5217_v57  ;;  %v5288_v57 = vld [vmem:[#allocation4 + $0xc] ss:$16 sps:$4 sm:$0xff]  }
  0xa2   :  { %545 = vmatprep.subr.bf16.mxu1 %v5222_v58  ;;  %v5291_v58 = vld [vmem:[#allocation4 + $0x24] ss:$16 sps:$4 sm:$0xff]   ;;  %1274 = vmatprep.subr.bf16.mxu0 %v5288_v57  ;;  %v5348_v57 = vld [vmem:[#allocation4 + $0x14c] ss:$16 sps:$4 sm:$0xff]  }
  0xa5   :  { %546 = vmatpush1.bf16.msra.mxu1 %v5220_v59  ;;  %v5289_v59 = vld [vmem:[#allocation4 + $0x20] ss:$16 sps:$4 sm:$0xff]  }
  0xa6   :  { %547 = vmatprep.subr.bf16.mxu1 %v5225_v60  ;;  %v5297_v60 = vld [vmem:[#allocation4 + $0x44] ss:$16 sps:$4 sm:$0xff]  }
  0xa9   :  { %548 = vmatpush1.bf16.msra.mxu1 %v5223_v61  ;;  %v5295_v61 = vld [vmem:[#allocation4 + $0x40] ss:$16 sps:$4 sm:$0xff]  }
  0xaa   :  { %549 = vmatprep.subr.bf16.mxu1 %v5228_v62  ;;  %v5303_v62 = vld [vmem:[#allocation4 + $0x64] ss:$16 sps:$4 sm:$0xff]  }
  0xad   :  { %550 = vmatpush1.bf16.msra.mxu1 %v5226_v63  ;;  %v5301_v63 = vld [vmem:[#allocation4 + $0x60] ss:$16 sps:$4 sm:$0xff]  }
  0xae   :  { %551 = vmatprep.subr.bf16.mxu1 %v5231_v0  ;;  %v5309_v0 = vld [vmem:[#allocation4 + $0x84] ss:$16 sps:$4 sm:$0xff]  }
  0xb1   :  { %552 = vmatpush1.bf16.msra.mxu1 %v5229_v1  ;;  %v5307_v1 = vld [vmem:[#allocation4 + $0x80] ss:$16 sps:$4 sm:$0xff]  }
  0xb2   :  { %553 = vmatprep.subr.bf16.mxu1 %v5234_v2  ;;  %v5315_v2 = vld [vmem:[#allocation4 + $0xa4] ss:$16 sps:$4 sm:$0xff]  }
  0xb5   :  { %554 = vmatpush1.bf16.msra.mxu1 %v5232_v3  ;;  %v5313_v3 = vld [vmem:[#allocation4 + $0xa0] ss:$16 sps:$4 sm:$0xff]  }
  0xb6   :  { %1233 = vmatprep.subr.bf16.mxu1 %v5285_v56  ;;  %v5340_v56 = vld [vmem:[#allocation4 + $0x128] ss:$16 sps:$4 sm:$0xff]  }
 0x14b   :  { %v303_v39 = vpop.f32.mrb[0].mxu1 }
 0x14c   :  { %v304_v40 = vadd.f32 %v303_v39, %v102_v37  ;;  %v305_v41 = vpop.f32.mrb[1].mxu1  ;;  %v5286_v37 = vld [vmem:[#allocation4 + $0x8] ss:$16 sps:$4 sm:$0xff]   ;;  %v5294_v39 = vld [vmem:[#allocation4 + $0x2c] ss:$16 sps:$4 sm:$0xff]  }
 0x14d   :  { %v306_v42 = vadd.f32 %v305_v41, %v106_v38  ;;  %v307_v43 = vpop.f32.mrb[2].mxu1  ;;  %v5300_v41 = vld [vmem:[#allocation4 + $0x4c] ss:$16 sps:$4 sm:$0xff]  }
 0x14e   :  { %vm310_vm0 = vcmp.gt.f32.partialorder %v304_v40, 0.0  ;;  %v312_v44 = vmul.f32 0.2, %v304_v40  ;;  %v308_v45 = vpop.f32.mrb[3].mxu1  ;;  %v5306_v43 = vld [vmem:[#allocation4 + $0x6c] ss:$16 sps:$4 sm:$0xff]  }
 0x14f   :  { %vm311_vm1 = vcmp.gt.f32.partialorder %v306_v42, 0.0  ;;  %v313_v46 = vmul.f32 0.2, %v306_v42  ;;  %v5312_v45 = vld [vmem:[#allocation4 + $0x8c] ss:$16 sps:$4 sm:$0xff]  }
 0x150   :  { %v314_v47 = vsel %vm310_vm0, %v304_v40, %v312_v44  ;;  %v5292_v40 = vld [vmem:[#allocation4 + $0x28] ss:$16 sps:$4 sm:$0xff]  }
 0x151   :  { %v315_v48 = vsel %vm311_vm1, %v306_v42, %v313_v46  ;;  %v316_v50 = vpack.c.bf16 %v314_v47, %v314_v47  ;;  %v5298_v42 = vld [vmem:[#allocation4 + $0x48] ss:$16 sps:$4 sm:$0xff]   ;;  %v5318_v47 = vld [vmem:[#allocation4 + $0xac] ss:$16 sps:$4 sm:$0xff]  }
 0x152   :  { %v317_v49 = vpack.c.bf16 %v315_v48, %v315_v48  ;;  %v5304_v44 = vld [vmem:[#allocation4 + $0x68] ss:$16 sps:$4 sm:$0xff]  }
 0x153   :  { %v5310_v46 = vld [vmem:[#allocation4 + $0x88] ss:$16 sps:$4 sm:$0xff]  }
 0x154   :  { %555 = vmatprep.mubr.bf16.mxu1 %v317_v49  ;;  %v5316_v48 = vld [vmem:[#allocation4 + $0xa8] ss:$16 sps:$4 sm:$0xff]   ;;  %v5324_v49 = vld [vmem:[#allocation4 + $0xcc] ss:$16 sps:$4 sm:$0xff]  }
 0x155   :  { %556 = vmatmul.mubr.bf16.vlgmr.msra.gmra.mrb[4].mxu1 %v316_v50  ;;  %v5322_v50 = vld [vmem:[#allocation4 + $0xc8] ss:$16 sps:$4 sm:$0xff]  }
 0x156   :  { %1234 = vmatpush1.bf16.msra.mxu1 %v5283_v55  ;;  %v5342_v55 = vld [vmem:[#allocation4 + $0x12c] ss:$16 sps:$4 sm:$0xff]  }
 0x157   :  { %1235 = vmatprep.subr.bf16.mxu1 %v5291_v58  ;;  %v5346_v58 = vld [vmem:[#allocation4 + $0x148] ss:$16 sps:$4 sm:$0xff]  }
 0x15a   :  { %1236 = vmatpush1.bf16.msra.mxu1 %v5289_v59  ;;  %v5354_v59 = vld [vmem:[#allocation4 + $0x16c] ss:$16 sps:$4 sm:$0xff]  }
 0x15b   :  { %1237 = vmatprep.subr.bf16.mxu1 %v5297_v60  ;;  %v5352_v60 = vld [vmem:[#allocation4 + $0x168] ss:$16 sps:$4 sm:$0xff]  }
 0x15e   :  { %1238 = vmatpush1.bf16.msra.mxu1 %v5295_v61  ;;  %v5360_v61 = vld [vmem:[#allocation4 + $0x18c] ss:$16 sps:$4 sm:$0xff]  }
 0x15f   :  { %1239 = vmatprep.subr.bf16.mxu1 %v5303_v62  ;;  %v5358_v62 = vld [vmem:[#allocation4 + $0x188] ss:$16 sps:$4 sm:$0xff]  }
 0x162   :  { %1240 = vmatpush1.bf16.msra.mxu1 %v5301_v63  ;;  %v5366_v63 = vld [vmem:[#allocation4 + $0x1ac] ss:$16 sps:$4 sm:$0xff]  }
 0x163   :  { %1241 = vmatprep.subr.bf16.mxu1 %v5309_v0  ;;  %v5364_v0 = vld [vmem:[#allocation4 + $0x1a8] ss:$16 sps:$4 sm:$0xff]  }
 0x166   :  { %1242 = vmatpush1.bf16.msra.mxu1 %v5307_v1  ;;  %v5369_v1 = vld [vmem:[#allocation4 + $0x1c4] ss:$16 sps:$4 sm:$0xff]  }
 0x167   :  { %1243 = vmatprep.subr.bf16.mxu1 %v5315_v2  ;;  %v5372_v2 = vld [vmem:[#allocation4 + $0x1cc] ss:$16 sps:$4 sm:$0xff]  }
 0x16a   :  { %1244 = vmatpush1.bf16.msra.mxu1 %v5313_v3  ;;  %v5367_v3 = vld [vmem:[#allocation4 + $0x1c0] ss:$16 sps:$4 sm:$0xff]  }
 0x16b   :  { %1245 = vmatprep.subr.bf16.mxu1 %v5321_v4  ;;  %v5370_v4 = vld [vmem:[#allocation4 + $0x1c8] ss:$16 sps:$4 sm:$0xff]  }
 0x16e   :  { %1246 = vmatpush1.bf16.msra.mxu1 %v5319_v5  ;;  %v5375_v5 = vld [vmem:[#allocation4 + $0x1e4] ss:$16 sps:$4 sm:$0xff]  }
 0x16f   :  { %1247 = vmatprep.subr.bf16.mxu1 %v5327_v6  ;;  %v5378_v6 = vld [vmem:[#allocation4 + $0x1ec] ss:$16 sps:$4 sm:$0xff]  }
 0x172   :  { %1248 = vmatpush1.bf16.msra.mxu1 %v5325_v7  ;;  %v5373_v7 = vld [vmem:[#allocation4 + $0x1e0] ss:$16 sps:$4 sm:$0xff]  }
 0x173   :  { %1249 = vmatprep.subr.bf16.mxu1 %v5333_v8  ;;  %v5376_v8 = vld [vmem:[#allocation4 + $0x1e8] ss:$16 sps:$4 sm:$0xff]  }
 0x176   :  { %1250 = vmatpush1.bf16.msra.mxu1 %v5331_v9  ;;  %v5381_v9 = vld [vmem:[#allocation4 + $0x204] ss:$16 sps:$4 sm:$0xff]  }
 0x177   :  { %1251 = vmatprep.subr.bf16.mxu1 %v5339_v10  ;;  %v5384_v10 = vld [vmem:[#allocation2 + $0x304] ss:$8 sps:$4 sm:$0xff]  }
 0x17a   :  { %1252 = vmatpush1.bf16.msra.mxu1 %v5337_v11  ;;  %v605_v11 = vld [vmem:[#allocation6 + $0x2] ss:$8 sm:$0x3] }
 0x17b   :  { %1253 = vmatprep.subr.bf16.mxu1 %v5345_v12  ;;  %v610_v12 = vrot.slane %v605_v11, %v6157_v34 }
 0x17e   :  { %1254 = vmatpush1.bf16.msra.mxu1 %v5343_v13  ;;  %v614_v13 = vrot.slane %v605_v11, %v6160_v36  ;;  %v5453_v11 = vld [vmem:[#allocation4 + $0x384] ss:$16 sps:$4 sm:$0xff]  }
 0x17f   :  { %1255 = vmatprep.subr.bf16.mxu1 %v5351_v14 }
 0x182   :  { %1256 = vmatpush1.bf16.msra.mxu1 %v5349_v15 }
 0x183   :  { %1257 = vmatprep.subr.bf16.mxu1 %v5357_v16 }
 0x186   :  { %1258 = vmatpush1.bf16.msra.mxu1 %v5355_v17 }
 0x187   :  { %1259 = vmatprep.subr.bf16.mxu1 %v5363_v18 }
 0x18a   :  { %1260 = vmatpush1.bf16.msra.mxu1 %v5361_v19 }
 0x18b   :  { %1261 = vmatprep.subr.bf16.mxu1 %v5369_v1  ;;  %v5433_v1 = vld [vmem:[#allocation4 + $0x320] ss:$16 sps:$4 sm:$0xff]  }
 0x18e   :  { %1262 = vmatpush1.bf16.msra.mxu1 %v5367_v3  ;;  %v5441_v3 = vld [vmem:[#allocation4 + $0x344] ss:$16 sps:$4 sm:$0xff]  }
 0x18f   :  { %1263 = vmatprep.subr.bf16.mxu1 %v5375_v5  ;;  %v5439_v5 = vld [vmem:[#allocation4 + $0x340] ss:$16 sps:$4 sm:$0xff]  }
 0x192   :  { %1264 = vmatpush1.bf16.msra.mxu1 %v5373_v7  ;;  %v5447_v7 = vld [vmem:[#allocation4 + $0x364] ss:$16 sps:$4 sm:$0xff]  }
 0x193   :  { %1728 = vmatprep.subr.bf16.mxu1 %v5384_v10  ;;  %v5448_v10 = vld [vmem:[#allocation2 + $0x3b0] ss:$8 sps:$4 sm:$0xff]  }
 0x228   :  { %v557_v23 = vpop.f32.mrb[4].mxu1 }
 0x229   :  { %v558_v24 = vadd.f32 %v557_v23, %v356_v21  ;;  %v559_v25 = vpop.f32.mrb[5].mxu1 }
 0x22a   :  { %v560_v26 = vadd.f32 %v559_v25, %v360_v22  ;;  %v561_v27 = vpop.f32.mrb[6].mxu1  ;;  %v5379_v25 = vld [vmem:[#allocation4 + $0x200] ss:$16 sps:$4 sm:$0xff]  }
 0x22b   :  { %vm564_vm2 = vcmp.gt.f32.partialorder %v558_v24, 0.0  ;;  %v566_v28 = vmul.f32 0.2, %v558_v24  ;;  %v562_v29 = vpop.f32.mrb[7].mxu1 }
 0x22c   :  { %vm565_vm3 = vcmp.gt.f32.partialorder %v560_v26, 0.0  ;;  %v567_v30 = vmul.f32 0.2, %v560_v26  ;;  %v5390_v29 = vld [vmem:[#allocation2 + $0x314] ss:$8 sps:$4 sm:$0xff]  }
 0x22d   :  { %v568_v31 = vsel %vm564_vm2, %v558_v24, %v566_v28  ;;  %v5387_v28 = vld [vmem:[#allocation4 + $0x224] ss:$16 sps:$4 sm:$0xff]  }
 0x22e   :  { %v569_v32 = vsel %vm565_vm3, %v560_v26, %v567_v30  ;;  %v570_v38 = vpack.c.bf16 %v568_v31, %v568_v31  ;;  %v5382_v26 = vld [vmem:[#allocation2 + $0x300] ss:$8 sps:$4 sm:$0xff]   ;;  %v5388_v31 = vld [vmem:[#allocation2 + $0x310] ss:$8 sps:$4 sm:$0xff]  }
 0x22f   :  { %v571_v35 = vpack.c.bf16 %v569_v32, %v569_v32  ;;  %v5385_v30 = vld [vmem:[#allocation4 + $0x220] ss:$16 sps:$4 sm:$0xff]   ;;  %v5393_v32 = vld [vmem:[#allocation4 + $0x244] ss:$16 sps:$4 sm:$0xff]  }
 0x231   :  { %809 = vmatprep.mubr.bf16.mxu0 %v571_v35  ;;  %v5396_v35 = vld [vmem:[#allocation2 + $0x324] ss:$8 sps:$4 sm:$0xff]  }
 0x232   :  { %810 = vmatmul.mubr.bf16.vlgmr.msra.gmra.mrb[0].mxu0 %v570_v38  ;;  %v5394_v38 = vld [vmem:[#allocation2 + $0x320] ss:$8 sps:$4 sm:$0xff]  }
 0x233   :  { %1275 = vmatpush1.bf16.msra.mxu0 %v5286_v37  ;;  %v5391_v37 = vld [vmem:[#allocation4 + $0x240] ss:$16 sps:$4 sm:$0xff]  }
 0x234   :  { %1276 = vmatprep.subr.bf16.mxu0 %v5294_v39  ;;  %v5399_v39 = vld [vmem:[#allocation4 + $0x264] ss:$16 sps:$4 sm:$0xff]  }
 0x237   :  { %1277 = vmatpush1.bf16.msra.mxu0 %v5292_v40  ;;  %v5402_v40 = vld [vmem:[#allocation2 + $0x334] ss:$8 sps:$4 sm:$0xff]  }
 0x238   :  { %1278 = vmatprep.subr.bf16.mxu0 %v5300_v41  ;;  %v5397_v41 = vld [vmem:[#allocation4 + $0x260] ss:$16 sps:$4 sm:$0xff]  }
 0x23b   :  { %1279 = vmatpush1.bf16.msra.mxu0 %v5298_v42  ;;  %v5400_v42 = vld [vmem:[#allocation2 + $0x330] ss:$8 sps:$4 sm:$0xff]  }
 0x23c   :  { %1280 = vmatprep.subr.bf16.mxu0 %v5306_v43  ;;  %v5405_v43 = vld [vmem:[#allocation4 + $0x284] ss:$16 sps:$4 sm:$0xff]  }
 0x23f   :  { %1281 = vmatpush1.bf16.msra.mxu0 %v5304_v44  ;;  %v5408_v44 = vld [vmem:[#allocation2 + $0x344] ss:$8 sps:$4 sm:$0xff]  }
 0x240   :  { %1282 = vmatprep.subr.bf16.mxu0 %v5312_v45  ;;  %v5403_v45 = vld [vmem:[#allocation4 + $0x280] ss:$16 sps:$4 sm:$0xff]  }
 0x243   :  { %1283 = vmatpush1.bf16.msra.mxu0 %v5310_v46  ;;  %v5406_v46 = vld [vmem:[#allocation2 + $0x340] ss:$8 sps:$4 sm:$0xff]  }
 0x244   :  { %1284 = vmatprep.subr.bf16.mxu0 %v5318_v47  ;;  %v5411_v47 = vld [vmem:[#allocation4 + $0x2a4] ss:$16 sps:$4 sm:$0xff]  }
 0x247   :  { %1285 = vmatpush1.bf16.msra.mxu0 %v5316_v48  ;;  %v5414_v48 = vld [vmem:[#allocation2 + $0x354] ss:$8 sps:$4 sm:$0xff]  }
 0x248   :  { %1286 = vmatprep.subr.bf16.mxu0 %v5324_v49  ;;  %v5409_v49 = vld [vmem:[#allocation4 + $0x2a0] ss:$16 sps:$4 sm:$0xff]  }
 0x24b   :  { %1287 = vmatpush1.bf16.msra.mxu0 %v5322_v50  ;;  %v5412_v50 = vld [vmem:[#allocation2 + $0x350] ss:$8 sps:$4 sm:$0xff]  }
 0x24c   :  { %1288 = vmatprep.subr.bf16.mxu0 %v5330_v51  ;;  %v5417_v51 = vld [vmem:[#allocation4 + $0x2c4] ss:$16 sps:$4 sm:$0xff]  }
 0x24f   :  { %1289 = vmatpush1.bf16.msra.mxu0 %v5328_v52  ;;  %v5420_v52 = vld [vmem:[#allocation2 + $0x364] ss:$8 sps:$4 sm:$0xff]  }
 0x250   :  { %1290 = vmatprep.subr.bf16.mxu0 %v5336_v53  ;;  %v5415_v53 = vld [vmem:[#allocation4 + $0x2c0] ss:$16 sps:$4 sm:$0xff]  }
 0x253   :  { %1291 = vmatpush1.bf16.msra.mxu0 %v5334_v54  ;;  %v5418_v54 = vld [vmem:[#allocation2 + $0x360] ss:$8 sps:$4 sm:$0xff]  }
 0x254   :  { %1292 = vmatprep.subr.bf16.mxu0 %v5342_v55  ;;  %v5423_v55 = vld [vmem:[#allocation4 + $0x2e4] ss:$16 sps:$4 sm:$0xff]  }
 0x257   :  { %1293 = vmatpush1.bf16.msra.mxu0 %v5340_v56  ;;  %v5426_v56 = vld [vmem:[#allocation2 + $0x374] ss:$8 sps:$4 sm:$0xff]  }
 0x258   :  { %1294 = vmatprep.subr.bf16.mxu0 %v5348_v57  ;;  %v5421_v57 = vld [vmem:[#allocation4 + $0x2e0] ss:$16 sps:$4 sm:$0xff]  }
 0x25b   :  { %1295 = vmatpush1.bf16.msra.mxu0 %v5346_v58  ;;  %v5424_v58 = vld [vmem:[#allocation2 + $0x370] ss:$8 sps:$4 sm:$0xff]  }
 0x25c   :  { %1296 = vmatprep.subr.bf16.mxu0 %v5354_v59  ;;  %v5429_v59 = vld [vmem:[#allocation4 + $0x304] ss:$16 sps:$4 sm:$0xff]  }
 0x25f   :  { %1297 = vmatpush1.bf16.msra.mxu0 %v5352_v60  ;;  %v5432_v60 = vld [vmem:[#allocation2 + $0x384] ss:$8 sps:$4 sm:$0xff]  }
 0x260   :  { %1298 = vmatprep.subr.bf16.mxu0 %v5360_v61  ;;  %v5427_v61 = vld [vmem:[#allocation4 + $0x300] ss:$16 sps:$4 sm:$0xff]  }
 0x263   :  { %1299 = vmatpush1.bf16.msra.mxu0 %v5358_v62  ;;  %v5430_v62 = vld [vmem:[#allocation2 + $0x380] ss:$8 sps:$4 sm:$0xff]  }
 0x264   :  { %1300 = vmatprep.subr.bf16.mxu0 %v5366_v63  ;;  %v5435_v63 = vld [vmem:[#allocation4 + $0x324] ss:$16 sps:$4 sm:$0xff]  }
 0x267   :  { %1301 = vmatpush1.bf16.msra.mxu0 %v5364_v0  ;;  %v5438_v0 = vld [vmem:[#allocation2 + $0x394] ss:$8 sps:$4 sm:$0xff]  }
 0x268   :  { %1302 = vmatprep.subr.bf16.mxu0 %v5372_v2  ;;  %v5436_v2 = vld [vmem:[#allocation2 + $0x390] ss:$8 sps:$4 sm:$0xff]  }
 0x26b   :  { %1303 = vmatpush1.bf16.msra.mxu0 %v5370_v4  ;;  %v5444_v4 = vld [vmem:[#allocation2 + $0x3a4] ss:$8 sps:$4 sm:$0xff]  }
 0x26c   :  { %1304 = vmatprep.subr.bf16.mxu0 %v5378_v6  ;;  %v5442_v6 = vld [vmem:[#allocation2 + $0x3a0] ss:$8 sps:$4 sm:$0xff]  }
 0x26f   :  { %1305 = vmatpush1.bf16.msra.mxu0 %v5376_v8  ;;  %v5450_v8 = vld [vmem:[#allocation2 + $0x3b4] ss:$8 sps:$4 sm:$0xff]  }
 0x270   :  { %2611 = vmatprep.subr.bf16.mxu0 %v5381_v9  ;;  %v5445_v9 = vld [vmem:[#allocation4 + $0x360] ss:$16 sps:$4 sm:$0xff]  }
 0x305   :  { %v811_v14 = vpop.f32.mrb[0].mxu0 }
 0x306   :  { %v812_v15 = vadd.f32 %v811_v14, %v610_v12  ;;  %v813_v16 = vpop.f32.mrb[1].mxu0  ;;  %v5456_v12 = vld [vmem:[#allocation2 + $0x3c4] ss:$8 sps:$4 sm:$0xff]   ;;  %v5454_v14 = vld [vmem:[#allocation2 + $0x3c0] ss:$8 sps:$4 sm:$0xff]  }
 0x307   :  { %v814_v17 = vadd.f32 %v813_v16, %v614_v13  ;;  %v815_v18 = vpop.f32.mrb[2].mxu0  ;;  %v5451_v13 = vld [vmem:[#allocation4 + $0x380] ss:$16 sps:$4 sm:$0xff]   ;;  %v5462_v16 = vld [vmem:[#allocation2 + $0x3d4] ss:$8 sps:$4 sm:$0xff]  }
 0x308   :  { %vm818_vm4 = vcmp.gt.f32.partialorder %v812_v15, 0.0  ;;  %v820_v19 = vmul.f32 0.2, %v812_v15  ;;  %v816_v20 = vpop.f32.mrb[3].mxu0  ;;  %v5460_v18 = vld [vmem:[#allocation2 + $0x3d0] ss:$8 sps:$4 sm:$0xff]  }
 0x309   :  { %vm819_vm5 = vcmp.gt.f32.partialorder %v814_v17, 0.0  ;;  %v821_v21 = vmul.f32 0.2, %v814_v17  ;;  %v5463_v20 = vld [vmem:[#allocation4 + $0x3c0] ss:$16 sps:$4 sm:$0xff]  }
 0x30a   :  { %v822_v22 = vsel %vm818_vm4, %v812_v15, %v820_v19  ;;  %v5459_v15 = vld [vmem:[#allocation4 + $0x3a4] ss:$16 sps:$4 sm:$0xff]  }
 0x30b   :  { %v823_v23 = vsel %vm819_vm5, %v814_v17, %v821_v21  ;;  %v824_v27 = vpack.c.bf16 %v822_v22, %v822_v22  ;;  %v5457_v17 = vld [vmem:[#allocation4 + $0x3a0] ss:$16 sps:$4 sm:$0xff]   ;;  %v5465_v19 = vld [vmem:[#allocation4 + $0x3c4] ss:$16 sps:$4 sm:$0xff]  }
 0x30c   :  { %v825_v24 = vpack.c.bf16 %v823_v23, %v823_v23  ;;  %v5468_v21 = vld [vmem:[#allocation2 + $0x3e4] ss:$8 sps:$4 sm:$0xff]   ;;  %v5466_v22 = vld [vmem:[#allocation2 + $0x3e0] ss:$8 sps:$4 sm:$0xff]  }
 0x30d   :  { %v5471_v23 = vld [vmem:[#allocation4 + $0x3e4] ss:$16 sps:$4 sm:$0xff]  }
 0x30e   :  { %1265 = vmatprep.mubr.bf16.mxu1 %v825_v24  ;;  %1306 = vmatprep.mubr.bf16.mxu0 %v825_v24  ;;  %v5469_v24 = vld [vmem:[#allocation4 + $0x3e0] ss:$16 sps:$4 sm:$0xff]  }
 0x30f   :  { %1266 = vmatmul.mubr.bf16.vlgmr.msra.gmra.mrb[8].mxu1 %v824_v27  ;;  %1307 = vmatmul.mubr.bf16.vlgmr.msra.gmra.mrb[4].mxu0 %v824_v27  ;;  %v1813_v27 = vld [vmem:[%s6259_s1 + $0x8] sm:$0xff] }
 0x310   :  { %2612 = vmatpush1.bf16.msra.mxu0 %v5379_v25  ;;  %1729 = vmatpush1.bf16.msra.mxu1 %v5382_v26  ;;  %v5474_v25 = vld [vmem:[#allocation2 + $0x3f4] ss:$8 sps:$4 sm:$0xff]   ;;  %v5472_v26 = vld [vmem:[#allocation2 + $0x3f0] ss:$8 sps:$4 sm:$0xff]  }
 0x311   :  { %2613 = vmatprep.subr.bf16.mxu0 %v5387_v28  ;;  %1730 = vmatprep.subr.bf16.mxu1 %v5390_v29  ;;  %v6171_v28 = vpack.c.bf16 %v1813_v27, %v1813_v27  ;;  %v5475_v29 = vld [vmem:[#allocation4 + $0x400] ss:$16 sps:$4 sm:$0xff]  }
 0x313   :  { %2643 = vmatprep.mubr.bf16.mxu0 %v6171_v28 }
 0x314   :  { %2614 = vmatpush1.bf16.msra.mxu0 %v5385_v30  ;;  %1731 = vmatpush1.bf16.msra.mxu1 %v5388_v31  ;;  %v5477_v30 = vld [vmem:[#allocation4 + $0x404] ss:$16 sps:$4 sm:$0xff]  }
 0x315   :  { %2615 = vmatprep.subr.bf16.mxu0 %v5393_v32  ;;  %1732 = vmatprep.subr.bf16.mxu1 %v5396_v35  ;;  %v1812_v31 = vld [vmem:[%s6259_s1] sm:$0xff] }
 0x316   :  { %v6176_v32 = vpack.c.bf16 %v1812_v31, %v1812_v31  ;;  %v5480_v35 = vld [vmem:[#allocation2 + $0x404] ss:$8 sps:$4 sm:$0xff]   ;;  %v5478_v31 = vld [vmem:[#allocation2 + $0x400] ss:$8 sps:$4 sm:$0xff]  }
 0x318   :  { %2616 = vmatpush1.bf16.msra.mxu0 %v5391_v37  ;;  %1733 = vmatpush1.bf16.msra.mxu1 %v5394_v38  ;;  %v5481_v37 = vld [vmem:[#allocation4 + $0x420] ss:$16 sps:$4 sm:$0xff]   ;;  %v5483_v38 = vld [vmem:[#allocation4 + $0x424] ss:$16 sps:$4 sm:$0xff]  }
 0x319   :  { %2617 = vmatprep.subr.bf16.mxu0 %v5399_v39  ;;  %1734 = vmatprep.subr.bf16.mxu1 %v5402_v40  ;;  %v5487_v39 = vld [vmem:[#allocation4 + $0x440] ss:$16 sps:$4 sm:$0xff]   ;;  %v5489_v40 = vld [vmem:[#allocation4 + $0x444] ss:$16 sps:$4 sm:$0xff]  }
 0x31c   :  { %2618 = vmatpush1.bf16.msra.mxu0 %v5397_v41  ;;  %1735 = vmatpush1.bf16.msra.mxu1 %v5400_v42  ;;  %v5493_v41 = vld [vmem:[#allocation4 + $0x460] ss:$16 sps:$4 sm:$0xff]   ;;  %v5495_v42 = vld [vmem:[#allocation4 + $0x464] ss:$16 sps:$4 sm:$0xff]  }
 0x31d   :  { %2619 = vmatprep.subr.bf16.mxu0 %v5405_v43  ;;  %1736 = vmatprep.subr.bf16.mxu1 %v5408_v44  ;;  %v5499_v43 = vld [vmem:[#allocation4 + $0x480] ss:$16 sps:$4 sm:$0xff]   ;;  %v5501_v44 = vld [vmem:[#allocation4 + $0x484] ss:$16 sps:$4 sm:$0xff]  }
 0x320   :  { %2620 = vmatpush1.bf16.msra.mxu0 %v5403_v45  ;;  %1737 = vmatpush1.bf16.msra.mxu1 %v5406_v46  ;;  %v5505_v45 = vld [vmem:[#allocation4 + $0x4a0] ss:$16 sps:$4 sm:$0xff]   ;;  %v5507_v46 = vld [vmem:[#allocation4 + $0x4a4] ss:$16 sps:$4 sm:$0xff]  }
 0x321   :  { %2621 = vmatprep.subr.bf16.mxu0 %v5411_v47  ;;  %1738 = vmatprep.subr.bf16.mxu1 %v5414_v48  ;;  %v5511_v47 = vld [vmem:[#allocation4 + $0x4c0] ss:$16 sps:$4 sm:$0xff]   ;;  %v5513_v48 = vld [vmem:[#allocation4 + $0x4c4] ss:$16 sps:$4 sm:$0xff]  }
 0x324   :  { %2622 = vmatpush1.bf16.msra.mxu0 %v5409_v49  ;;  %1739 = vmatpush1.bf16.msra.mxu1 %v5412_v50  ;;  %v5517_v49 = vld [vmem:[#allocation4 + $0x4e0] ss:$16 sps:$4 sm:$0xff]   ;;  %v5519_v50 = vld [vmem:[#allocation4 + $0x4e4] ss:$16 sps:$4 sm:$0xff]  }
 0x325   :  { %2623 = vmatprep.subr.bf16.mxu0 %v5417_v51  ;;  %1740 = vmatprep.subr.bf16.mxu1 %v5420_v52  ;;  %v5523_v51 = vld [vmem:[#allocation4 + $0x500] ss:$16 sps:$4 sm:$0xff]   ;;  %v5525_v52 = vld [vmem:[#allocation4 + $0x504] ss:$16 sps:$4 sm:$0xff]  }
 0x328   :  { %2624 = vmatpush1.bf16.msra.mxu0 %v5415_v53  ;;  %1741 = vmatpush1.bf16.msra.mxu1 %v5418_v54  ;;  %v5529_v53 = vld [vmem:[#allocation4 + $0x520] ss:$16 sps:$4 sm:$0xff]   ;;  %v5531_v54 = vld [vmem:[#allocation4 + $0x524] ss:$16 sps:$4 sm:$0xff]  }
 0x329   :  { %2625 = vmatprep.subr.bf16.mxu0 %v5423_v55  ;;  %1742 = vmatprep.subr.bf16.mxu1 %v5426_v56  ;;  %v5535_v55 = vld [vmem:[#allocation4 + $0x540] ss:$16 sps:$4 sm:$0xff]   ;;  %v5537_v56 = vld [vmem:[#allocation4 + $0x544] ss:$16 sps:$4 sm:$0xff]  }
 0x32c   :  { %2626 = vmatpush1.bf16.msra.mxu0 %v5421_v57  ;;  %1743 = vmatpush1.bf16.msra.mxu1 %v5424_v58  ;;  %v5541_v57 = vld [vmem:[#allocation4 + $0x560] ss:$16 sps:$4 sm:$0xff]   ;;  %v5543_v58 = vld [vmem:[#allocation4 + $0x564] ss:$16 sps:$4 sm:$0xff]  }
 0x32d   :  { %2627 = vmatprep.subr.bf16.mxu0 %v5429_v59  ;;  %1744 = vmatprep.subr.bf16.mxu1 %v5432_v60  ;;  %v5547_v59 = vld [vmem:[#allocation4 + $0x580] ss:$16 sps:$4 sm:$0xff]   ;;  %v5549_v60 = vld [vmem:[#allocation4 + $0x584] ss:$16 sps:$4 sm:$0xff]  }
 0x330   :  { %2628 = vmatpush1.bf16.msra.mxu0 %v5427_v61  ;;  %1745 = vmatpush1.bf16.msra.mxu1 %v5430_v62  ;;  %v5553_v61 = vld [vmem:[#allocation4 + $0x5a0] ss:$16 sps:$4 sm:$0xff]   ;;  %v5555_v62 = vld [vmem:[#allocation4 + $0x5a4] ss:$16 sps:$4 sm:$0xff]  }
 0x331   :  { %2629 = vmatprep.subr.bf16.mxu0 %v5435_v63  ;;  %1746 = vmatprep.subr.bf16.mxu1 %v5438_v0  ;;  %v5559_v63 = vld [vmem:[#allocation4 + $0x5c0] ss:$16 sps:$4 sm:$0xff]   ;;  %v5561_v0 = vld [vmem:[#allocation4 + $0x5c4] ss:$16 sps:$4 sm:$0xff]  }
 0x334   :  { %2630 = vmatpush1.bf16.msra.mxu0 %v5433_v1  ;;  %1747 = vmatpush1.bf16.msra.mxu1 %v5436_v2  ;;  %v5565_v1 = vld [vmem:[#allocation4 + $0x5e0] ss:$16 sps:$4 sm:$0xff]   ;;  %v5567_v2 = vld [vmem:[#allocation4 + $0x5e4] ss:$16 sps:$4 sm:$0xff]  }
 0x335   :  { %2631 = vmatprep.subr.bf16.mxu0 %v5441_v3  ;;  %1748 = vmatprep.subr.bf16.mxu1 %v5444_v4  ;;  %v1815_v3 = vld [vmem:[%s6259_s1 + $0x18] sm:$0xff] }
 0x336   :  { %v6183_v4 = vpack.c.bf16 %v1815_v3, %v1815_v3 }
 0x338   :  { %2632 = vmatpush1.bf16.msra.mxu0 %v5439_v5  ;;  %1749 = vmatpush1.bf16.msra.mxu1 %v5442_v6  ;;  %v1814_v5 = vld [vmem:[%s6259_s1 + $0x10] sm:$0xff] }
 0x339   :  { %2633 = vmatprep.subr.bf16.mxu0 %v5447_v7  ;;  %1750 = vmatprep.subr.bf16.mxu1 %v5450_v8  ;;  %v6188_v6 = vpack.c.bf16 %v1814_v5, %v1814_v5  ;;  %v6192_v7 = vld [vmem:[#allocation6 + $0x3] ss:$8 sm:$0xf]  ;;  %v6195_v8 = vsub.s32 3, %v6154_v33 }
 0x33a   :  { %v5562_v5 = vld [vmem:[#allocation2 + $0x4e0] ss:$8 sps:$4 sm:$0xff]  }
 0x33c   :  { %2634 = vmatpush1.bf16.msra.mxu0 %v5445_v9  ;;  %1751 = vmatpush1.bf16.msra.mxu1 %v5448_v10  ;;  %v896_v9 = vrot.slane %v6192_v7, %v6157_v34  ;;  %v900_v10 = vrot.slane %v6192_v7, %v6160_v36 }
 0x33d   :  { %2635 = vmatprep.subr.bf16.mxu0 %v5453_v11  ;;  %1752 = vmatprep.subr.bf16.mxu1 %v5456_v12  ;;  %v908_v11 = vrot.slane %v6192_v7, %v6195_v8 }
 0x340   :  { %2636 = vmatpush1.bf16.msra.mxu0 %v5451_v13  ;;  %1753 = vmatpush1.bf16.msra.mxu1 %v5454_v14 }
 0x341   :  { %2637 = vmatprep.subr.bf16.mxu0 %v5459_v15  ;;  %1754 = vmatprep.subr.bf16.mxu1 %v5462_v16 }
 0x344   :  { %2638 = vmatpush1.bf16.msra.mxu0 %v5457_v17  ;;  %1755 = vmatpush1.bf16.msra.mxu1 %v5460_v18 }
 0x345   :  { %2639 = vmatprep.subr.bf16.mxu0 %v5465_v19  ;;  %1756 = vmatprep.subr.bf16.mxu1 %v5468_v21 }
 0x348   :  { %2640 = vmatpush1.bf16.msra.mxu0 %v5463_v20  ;;  %1757 = vmatpush1.bf16.msra.mxu1 %v5466_v22 }
 0x349   :  { %2641 = vmatprep.subr.bf16.mxu0 %v5471_v23  ;;  %1758 = vmatprep.subr.bf16.mxu1 %v5474_v25 }
 0x34c   :  { %2642 = vmatpush1.bf16.msra.mxu0 %v5469_v24  ;;  %1759 = vmatpush1.bf16.msra.mxu1 %v5472_v26 }
 0x34d   :  { %2652 = vmatprep.subr.bf16.mxu0 %v5477_v30  ;;  %1769 = vmatprep.subr.bf16.mxu1 %v5480_v35 }
 0x34f   :  { %2644 = vmatmul.mubr.bf16.vlgmr.msra.gmra.mrb[8].mxu0 %v6176_v32 }
 0x350   :  { %2653 = vmatpush1.bf16.msra.mxu0 %v5475_v29  ;;  %2684 = vmatprep.mubr.bf16.mxu0 %v6183_v4 }
 0x351   :  { %2654 = vmatprep.subr.bf16.mxu0 %v5483_v38 }
 0x354   :  { %2655 = vmatpush1.bf16.msra.mxu0 %v5481_v37  ;;  %v5486_v37 = vld [vmem:[#allocation2 + $0x414] ss:$8 sps:$4 sm:$0xff]  }
 0x355   :  { %2656 = vmatprep.subr.bf16.mxu0 %v5489_v40  ;;  %v5492_v40 = vld [vmem:[#allocation2 + $0x424] ss:$8 sps:$4 sm:$0xff]  }
 0x358   :  { %2657 = vmatpush1.bf16.msra.mxu0 %v5487_v39  ;;  %v5484_v39 = vld [vmem:[#allocation2 + $0x410] ss:$8 sps:$4 sm:$0xff]  }
 0x359   :  { %2658 = vmatprep.subr.bf16.mxu0 %v5495_v42  ;;  %v5498_v42 = vld [vmem:[#allocation2 + $0x434] ss:$8 sps:$4 sm:$0xff]  }
 0x35c   :  { %2659 = vmatpush1.bf16.msra.mxu0 %v5493_v41  ;;  %v5490_v41 = vld [vmem:[#allocation2 + $0x420] ss:$8 sps:$4 sm:$0xff]  }
 0x35d   :  { %2660 = vmatprep.subr.bf16.mxu0 %v5501_v44  ;;  %v5504_v44 = vld [vmem:[#allocation2 + $0x444] ss:$8 sps:$4 sm:$0xff]  }
 0x360   :  { %2661 = vmatpush1.bf16.msra.mxu0 %v5499_v43  ;;  %v5496_v43 = vld [vmem:[#allocation2 + $0x430] ss:$8 sps:$4 sm:$0xff]  }
 0x361   :  { %2662 = vmatprep.subr.bf16.mxu0 %v5507_v46  ;;  %v5510_v46 = vld [vmem:[#allocation2 + $0x454] ss:$8 sps:$4 sm:$0xff]  }
 0x364   :  { %2663 = vmatpush1.bf16.msra.mxu0 %v5505_v45  ;;  %v5502_v45 = vld [vmem:[#allocation2 + $0x440] ss:$8 sps:$4 sm:$0xff]  }
 0x365   :  { %2664 = vmatprep.subr.bf16.mxu0 %v5513_v48  ;;  %v5516_v48 = vld [vmem:[#allocation2 + $0x464] ss:$8 sps:$4 sm:$0xff]  }
 0x368   :  { %2665 = vmatpush1.bf16.msra.mxu0 %v5511_v47  ;;  %v5508_v47 = vld [vmem:[#allocation2 + $0x450] ss:$8 sps:$4 sm:$0xff]  }
 0x369   :  { %2666 = vmatprep.subr.bf16.mxu0 %v5519_v50  ;;  %v5522_v50 = vld [vmem:[#allocation2 + $0x474] ss:$8 sps:$4 sm:$0xff]  }
 0x36c   :  { %2667 = vmatpush1.bf16.msra.mxu0 %v5517_v49  ;;  %v5514_v49 = vld [vmem:[#allocation2 + $0x460] ss:$8 sps:$4 sm:$0xff]  }
 0x36d   :  { %2668 = vmatprep.subr.bf16.mxu0 %v5525_v52  ;;  %v5528_v52 = vld [vmem:[#allocation2 + $0x484] ss:$8 sps:$4 sm:$0xff]  }
 0x370   :  { %2669 = vmatpush1.bf16.msra.mxu0 %v5523_v51  ;;  %v5520_v51 = vld [vmem:[#allocation2 + $0x470] ss:$8 sps:$4 sm:$0xff]  }
 0x371   :  { %2670 = vmatprep.subr.bf16.mxu0 %v5531_v54  ;;  %v5534_v54 = vld [vmem:[#allocation2 + $0x494] ss:$8 sps:$4 sm:$0xff]  }
 0x374   :  { %2671 = vmatpush1.bf16.msra.mxu0 %v5529_v53  ;;  %v5526_v53 = vld [vmem:[#allocation2 + $0x480] ss:$8 sps:$4 sm:$0xff]  }
 0x375   :  { %2672 = vmatprep.subr.bf16.mxu0 %v5537_v56  ;;  %v5540_v56 = vld [vmem:[#allocation2 + $0x4a4] ss:$8 sps:$4 sm:$0xff]  }
 0x378   :  { %2673 = vmatpush1.bf16.msra.mxu0 %v5535_v55  ;;  %v5532_v55 = vld [vmem:[#allocation2 + $0x490] ss:$8 sps:$4 sm:$0xff]  }
 0x379   :  { %2674 = vmatprep.subr.bf16.mxu0 %v5543_v58  ;;  %v5546_v58 = vld [vmem:[#allocation2 + $0x4b4] ss:$8 sps:$4 sm:$0xff]  }
 0x37c   :  { %2675 = vmatpush1.bf16.msra.mxu0 %v5541_v57  ;;  %v5538_v57 = vld [vmem:[#allocation2 + $0x4a0] ss:$8 sps:$4 sm:$0xff]  }
 0x37d   :  { %2676 = vmatprep.subr.bf16.mxu0 %v5549_v60  ;;  %v5552_v60 = vld [vmem:[#allocation2 + $0x4c4] ss:$8 sps:$4 sm:$0xff]  }
 0x380   :  { %2677 = vmatpush1.bf16.msra.mxu0 %v5547_v59  ;;  %v5544_v59 = vld [vmem:[#allocation2 + $0x4b0] ss:$8 sps:$4 sm:$0xff]  }
 0x381   :  { %2678 = vmatprep.subr.bf16.mxu0 %v5555_v62  ;;  %v5550_v62 = vld [vmem:[#allocation2 + $0x4c0] ss:$8 sps:$4 sm:$0xff]  }
 0x384   :  { %2679 = vmatpush1.bf16.msra.mxu0 %v5553_v61  ;;  %v6206_v61 = vsub.s32 2, %v6154_v33  ;;  %v5568_v33 = vld [vmem:[#allocation2 + $0x4f0] ss:$8 sps:$4 sm:$0xff]  }
 0x385   :  { %2680 = vmatprep.subr.bf16.mxu0 %v5561_v0 }
 0x386   :  { %v904_v0 = vrot.slane %v6192_v7, %v6206_v61 }
 0x388   :  { %2681 = vmatpush1.bf16.msra.mxu0 %v5559_v63  ;;  %v5558_v63 = vld [vmem:[#allocation2 + $0x4d4] ss:$8 sps:$4 sm:$0xff]  }
 0x389   :  { %2682 = vmatprep.subr.bf16.mxu0 %v5567_v2  ;;  %v5564_v2 = vld [vmem:[#allocation2 + $0x4e4] ss:$8 sps:$4 sm:$0xff]  }
 0x38c   :  { %2683 = vmatpush1.bf16.msra.mxu0 %v5565_v1  ;;  %v5556_v1 = vld [vmem:[#allocation2 + $0x4d0] ss:$8 sps:$4 sm:$0xff]  }
 0x38f   :  { %2685 = vmatmul.mubr.bf16.vlgmr.msra.gmra.mrb[8].mxu0 %v6188_v6 }
 0x3e2   :  { %v1267_v12 = vpop.f32.mrb[8].mxu1  ;;  %v6203_v13 = vpop.f32.mrb[4].mxu0 }
 0x3e3   :  { %v1268_v14 = vadd.f32 %v1267_v12, %v896_v9  ;;  %v1269_v15 = vpop.f32.mrb[9].mxu1  ;;  %v1310_v16 = vpop.f32.mrb[5].mxu0  ;;  %v1309_v3 = vadd.f32 %v6203_v13, %v904_v0  ;;  %v5570_v9 = vld [vmem:[#allocation2 + $0x4f4] ss:$8 sps:$4 sm:$0xff]   ;;  %v5574_v13 = vld [vmem:[#allocation4 + $0x228] ss:$16 sps:$4 sm:$0xff]  }
 0x3e4   :  { %v1270_v17 = vadd.f32 %v1269_v15, %v900_v10  ;;  %v1311_v18 = vadd.f32 %v1310_v16, %v908_v11  ;;  %v1271_v19 = vpop.f32.mrb[10].mxu1  ;;  %v1312_v20 = vpop.f32.mrb[6].mxu0  ;;  %v5573_v11 = vld [vmem:[#allocation4 + $0x20c] ss:$16 sps:$4 sm:$0xff]   ;;  %v5667_v16 = vld [vmem:[#allocation2 + $0x500] ss:$8 sps:$4 sm:$0xff]  }
 0x3e5   :  { %vm1315_vm6 = vcmp.gt.f32.partialorder %v1268_v14, 0.0  ;;  %v1319_v21 = vmul.f32 0.2, %v1268_v14  ;;  %v1272_v25 = vpop.f32.mrb[11].mxu1  ;;  %v1313_v26 = vpop.f32.mrb[7].mxu0  ;;  %vm1317_vm9 = vcmp.gt.f32.partialorder %v1309_v3, 0.0 }
 0x3e6   :  { %vm1316_vm7 = vcmp.gt.f32.partialorder %v1270_v17, 0.0  ;;  %v1320_v22 = vmul.f32 0.2, %v1270_v17  ;;  %vm1318_vm8 = vcmp.gt.f32.partialorder %v1311_v18, 0.0  ;;  %v1322_v23 = vmul.f32 0.2, %v1311_v18 }
 0x3e7   :  { %v1323_v24 = vsel %vm1315_vm6, %v1268_v14, %v1319_v21  ;;  %v1321_v10 = vmul.f32 0.2, %v1309_v3  ;;  %v5571_v14 = vld [vmem:[#allocation4 + $0x208] ss:$16 sps:$4 sm:$0xff]   ;;  %v5576_v15 = vld [vmem:[#allocation4 + $0x22c] ss:$16 sps:$4 sm:$0xff]  }
 0x3e8   :  { %v1324_v27 = vsel %vm1316_vm7, %v1270_v17, %v1320_v22  ;;  %v1326_v29 = vsel %vm1318_vm8, %v1311_v18, %v1322_v23  ;;  %v1327_v35 = vpack.c.bf16 %v1323_v24, %v1323_v24  ;;  %v5669_v17 = vld [vmem:[#allocation2 + $0x504] ss:$8 sps:$4 sm:$0xff]   ;;  %v5672_v18 = vld [vmem:[#allocation2 + $0x514] ss:$8 sps:$4 sm:$0xff]   ;;  %v5670_v20 = vld [vmem:[#allocation2 + $0x510] ss:$8 sps:$4 sm:$0xff]  }
 0x3e9   :  { %v1328_v30 = vpack.c.bf16 %v1324_v27, %v1324_v27  ;;  %v1330_v38 = vpack.c.bf16 %v1326_v29, %v1326_v29  ;;  %v1325_v12 = vsel %vm1317_vm9, %v1309_v3, %v1321_v10  ;;  %v5579_v19 = vld [vmem:[#allocation4 + $0x24c] ss:$16 sps:$4 sm:$0xff]   ;;  %3188 = vmatprep.subr.bf16.mxu0 %v5669_v17  ;;  %v5577_v22 = vld [vmem:[#allocation4 + $0x248] ss:$16 sps:$4 sm:$0xff]  }
 0x3ea   :  { %v1329_v7 = vpack.c.bf16 %v1325_v12, %v1325_v12  ;;  %3189 = vmatpush1.bf16.msra.mxu0 %v5667_v16  ;;  %v5675_v21 = vld [vmem:[#allocation2 + $0x524] ss:$8 sps:$4 sm:$0xff]   ;;  %v5673_v24 = vld [vmem:[#allocation2 + $0x520] ss:$8 sps:$4 sm:$0xff]   ;;  %v5678_v25 = vld [vmem:[#allocation2 + $0x534] ss:$8 sps:$4 sm:$0xff]  }
 0x3eb   :  { %1760 = vmatprep.mubr.bf16.mxu1 %v1328_v30  ;;  %3190 = vmatprep.subr.bf16.mxu0 %v5672_v18  ;;  %v5582_v23 = vld [vmem:[#allocation4 + $0x26c] ss:$16 sps:$4 sm:$0xff]   ;;  %v5580_v26 = vld [vmem:[#allocation4 + $0x268] ss:$16 sps:$4 sm:$0xff]  }
 0x3ec   :  { %1761 = vmatmul.mubr.bf16.vlgmr.msra.gmra.mrb[12].mxu1 %v1327_v35  ;;  %v5676_v27 = vld [vmem:[#allocation2 + $0x530] ss:$8 sps:$4 sm:$0xff]   ;;  %v5681_v29 = vld [vmem:[#allocation2 + $0x544] ss:$8 sps:$4 sm:$0xff]   ;;  %v5679_v35 = vld [vmem:[#allocation2 + $0x540] ss:$8 sps:$4 sm:$0xff]  }
 0x3ed   :  { %1770 = vmatpush1.bf16.msra.mxu1 %v5478_v31  ;;  %1801 = vmatprep.mubr.bf16.mxu1 %v1330_v38  ;;  %v5583_v30 = vld [vmem:[#allocation4 + $0x288] ss:$16 sps:$4 sm:$0xff]   ;;  %v5588_v31 = vld [vmem:[#allocation4 + $0x2ac] ss:$16 sps:$4 sm:$0xff]  }
 0x3ee   :  { %1771 = vmatprep.subr.bf16.mxu1 %v5486_v37  ;;  %3191 = vmatpush1.bf16.msra.mxu0 %v5670_v20  ;;  %v5684_v37 = vld [vmem:[#allocation2 + $0x554] ss:$8 sps:$4 sm:$0xff]   ;;  %v5586_v38 = vld [vmem:[#allocation4 + $0x2a8] ss:$16 sps:$4 sm:$0xff]  }
 0x3ef   :  { %3192 = vmatprep.subr.bf16.mxu0 %v5675_v21  ;;  %v5609_v0 = vld [vmem:[#allocation4 + $0x38c] ss:$16 sps:$4 sm:$0xff]   ;;  %v5607_v3 = vld [vmem:[#allocation4 + $0x388] ss:$16 sps:$4 sm:$0xff]  }
 0x3f0   :  { %v5708_v10 = vld [vmem:[#allocation2 + $0x5d4] ss:$8 sps:$4 sm:$0xff]   ;;  %v5706_v12 = vld [vmem:[#allocation2 + $0x5d0] ss:$8 sps:$4 sm:$0xff]  }
 0x3f1   :  { %1772 = vmatpush1.bf16.msra.mxu1 %v5484_v39  ;;  %v5591_v39 = vld [vmem:[#allocation4 + $0x2cc] ss:$16 sps:$4 sm:$0xff]   ;;  %v5619_v17 = vld [vmem:[#allocation4 + $0x408] ss:$16 sps:$4 sm:$0xff]  }
 0x3f2   :  { %1773 = vmatprep.subr.bf16.mxu1 %v5492_v40  ;;  %3193 = vmatpush1.bf16.msra.mxu0 %v5673_v24  ;;  %v5682_v40 = vld [vmem:[#allocation2 + $0x550] ss:$8 sps:$4 sm:$0xff]   ;;  %v5621_v16 = vld [vmem:[#allocation4 + $0x40c] ss:$16 sps:$4 sm:$0xff]  }
 0x3f3   :  { %3194 = vmatprep.subr.bf16.mxu0 %v5678_v25  ;;  %v5622_v18 = vld [vmem:[#allocation4 + $0x428] ss:$16 sps:$4 sm:$0xff]   ;;  %v5630_v21 = vld [vmem:[#allocation4 + $0x46c] ss:$16 sps:$4 sm:$0xff]  }
 0x3f4   :  { %v5625_v20 = vld [vmem:[#allocation4 + $0x448] ss:$16 sps:$4 sm:$0xff]   ;;  %v6214_v25 = vld [vmem:[#allocation6 + $0x5] ss:$8 sm:$0xf] }
 0x3f5   :  { %1774 = vmatpush1.bf16.msra.mxu1 %v5490_v41  ;;  %v5687_v41 = vld [vmem:[#allocation2 + $0x564] ss:$8 sps:$4 sm:$0xff]   ;;  %v5631_v24 = vld [vmem:[#allocation4 + $0x488] ss:$16 sps:$4 sm:$0xff]  }
 0x3f6   :  { %1775 = vmatprep.subr.bf16.mxu1 %v5498_v42  ;;  %3195 = vmatpush1.bf16.msra.mxu0 %v5676_v27  ;;  %v5589_v42 = vld [vmem:[#allocation4 + $0x2c8] ss:$16 sps:$4 sm:$0xff]   ;;  %v5639_v27 = vld [vmem:[#allocation4 + $0x4cc] ss:$16 sps:$4 sm:$0xff]  }
 0x3f7   :  { %3196 = vmatprep.subr.bf16.mxu0 %v5681_v29  ;;  %v5711_v29 = vld [vmem:[#allocation2 + $0x5e4] ss:$8 sps:$4 sm:$0xff]  }
 0x3f9   :  { %1776 = vmatpush1.bf16.msra.mxu1 %v5496_v43  ;;  %v5594_v43 = vld [vmem:[#allocation4 + $0x2ec] ss:$16 sps:$4 sm:$0xff]  }
 0x3fa   :  { %1777 = vmatprep.subr.bf16.mxu1 %v5504_v44  ;;  %3197 = vmatpush1.bf16.msra.mxu0 %v5679_v35  ;;  %v5685_v44 = vld [vmem:[#allocation2 + $0x560] ss:$8 sps:$4 sm:$0xff]  }
 0x3fb   :  { %3198 = vmatprep.subr.bf16.mxu0 %v5684_v37 }
 0x3fd   :  { %1778 = vmatpush1.bf16.msra.mxu1 %v5502_v45  ;;  %v5690_v45 = vld [vmem:[#allocation2 + $0x574] ss:$8 sps:$4 sm:$0xff]  }
 0x3fe   :  { %1779 = vmatprep.subr.bf16.mxu1 %v5510_v46  ;;  %3199 = vmatpush1.bf16.msra.mxu0 %v5682_v40  ;;  %v5592_v46 = vld [vmem:[#allocation4 + $0x2e8] ss:$16 sps:$4 sm:$0xff]  }
 0x3ff   :  { %3200 = vmatprep.subr.bf16.mxu0 %v5687_v41 }
 0x401   :  { %1780 = vmatpush1.bf16.msra.mxu1 %v5508_v47  ;;  %v5597_v47 = vld [vmem:[#allocation4 + $0x30c] ss:$16 sps:$4 sm:$0xff]  }
 0x402   :  { %1781 = vmatprep.subr.bf16.mxu1 %v5516_v48  ;;  %3201 = vmatpush1.bf16.msra.mxu0 %v5685_v44  ;;  %v5688_v48 = vld [vmem:[#allocation2 + $0x570] ss:$8 sps:$4 sm:$0xff]   ;;  %v5714_v44 = vld [vmem:[#allocation2 + $0x5f4] ss:$8 sps:$4 sm:$0xff]  }
 0x403   :  { %3202 = vmatprep.subr.bf16.mxu0 %v5690_v45 }
 0x405   :  { %1782 = vmatpush1.bf16.msra.mxu1 %v5514_v49  ;;  %v5693_v49 = vld [vmem:[#allocation2 + $0x584] ss:$8 sps:$4 sm:$0xff]  }
 0x406   :  { %1783 = vmatprep.subr.bf16.mxu1 %v5522_v50  ;;  %v5595_v50 = vld [vmem:[#allocation4 + $0x308] ss:$16 sps:$4 sm:$0xff]   ;;  %3203 = vmatpush1.bf16.msra.mxu0 %v5688_v48  ;;  %v5717_v48 = vld [vmem:[#allocation2 + $0x604] ss:$8 sps:$4 sm:$0xff]  }
 0x407   :  { %3204 = vmatprep.subr.bf16.mxu0 %v5693_v49  ;;  %v5640_v49 = vld [vmem:[#allocation4 + $0x4e8] ss:$16 sps:$4 sm:$0xff]  }
 0x409   :  { %1784 = vmatpush1.bf16.msra.mxu1 %v5520_v51  ;;  %v5600_v51 = vld [vmem:[#allocation4 + $0x32c] ss:$16 sps:$4 sm:$0xff]  }
 0x40a   :  { %1785 = vmatprep.subr.bf16.mxu1 %v5528_v52  ;;  %v5691_v52 = vld [vmem:[#allocation2 + $0x580] ss:$8 sps:$4 sm:$0xff]  }
 0x40b   :  { %3205 = vmatpush1.bf16.msra.mxu0 %v5691_v52  ;;  %v5645_v52 = vld [vmem:[#allocation4 + $0x50c] ss:$16 sps:$4 sm:$0xff]  }
 0x40d   :  { %1786 = vmatpush1.bf16.msra.mxu1 %v5526_v53  ;;  %v5696_v53 = vld [vmem:[#allocation2 + $0x594] ss:$8 sps:$4 sm:$0xff]  }
 0x40e   :  { %1787 = vmatprep.subr.bf16.mxu1 %v5534_v54  ;;  %v5598_v54 = vld [vmem:[#allocation4 + $0x328] ss:$16 sps:$4 sm:$0xff]   ;;  %3206 = vmatprep.subr.bf16.mxu0 %v5696_v53 }
 0x411   :  { %1788 = vmatpush1.bf16.msra.mxu1 %v5532_v55  ;;  %v5603_v55 = vld [vmem:[#allocation4 + $0x34c] ss:$16 sps:$4 sm:$0xff]  }
 0x412   :  { %1789 = vmatprep.subr.bf16.mxu1 %v5540_v56  ;;  %v5694_v56 = vld [vmem:[#allocation2 + $0x590] ss:$8 sps:$4 sm:$0xff]  }
 0x413   :  { %3207 = vmatpush1.bf16.msra.mxu0 %v5694_v56  ;;  %v5643_v56 = vld [vmem:[#allocation4 + $0x508] ss:$16 sps:$4 sm:$0xff]  }
 0x415   :  { %1790 = vmatpush1.bf16.msra.mxu1 %v5538_v57  ;;  %v5699_v57 = vld [vmem:[#allocation2 + $0x5a4] ss:$8 sps:$4 sm:$0xff]  }
 0x416   :  { %1791 = vmatprep.subr.bf16.mxu1 %v5546_v58  ;;  %v5601_v58 = vld [vmem:[#allocation4 + $0x348] ss:$16 sps:$4 sm:$0xff]   ;;  %3208 = vmatprep.subr.bf16.mxu0 %v5699_v57  ;;  %v5648_v57 = vld [vmem:[#allocation4 + $0x52c] ss:$16 sps:$4 sm:$0xff]  }
 0x419   :  { %1792 = vmatpush1.bf16.msra.mxu1 %v5544_v59  ;;  %v5606_v59 = vld [vmem:[#allocation4 + $0x36c] ss:$16 sps:$4 sm:$0xff]  }
 0x41a   :  { %1793 = vmatprep.subr.bf16.mxu1 %v5552_v60  ;;  %v5697_v60 = vld [vmem:[#allocation2 + $0x5a0] ss:$8 sps:$4 sm:$0xff]  }
 0x41b   :  { %3209 = vmatpush1.bf16.msra.mxu0 %v5697_v60  ;;  %v5646_v60 = vld [vmem:[#allocation4 + $0x528] ss:$16 sps:$4 sm:$0xff]  }
 0x41d   :  { %1794 = vmatpush1.bf16.msra.mxu1 %v5550_v62  ;;  %v5702_v62 = vld [vmem:[#allocation2 + $0x5b4] ss:$8 sps:$4 sm:$0xff]  }
 0x41e   :  { %1795 = vmatprep.subr.bf16.mxu1 %v5558_v63  ;;  %v5604_v63 = vld [vmem:[#allocation4 + $0x368] ss:$16 sps:$4 sm:$0xff]   ;;  %3210 = vmatprep.subr.bf16.mxu0 %v5702_v62  ;;  %v5651_v62 = vld [vmem:[#allocation4 + $0x54c] ss:$16 sps:$4 sm:$0xff]  }
 0x421   :  { %1796 = vmatpush1.bf16.msra.mxu1 %v5556_v1  ;;  %v5700_v1 = vld [vmem:[#allocation2 + $0x5b0] ss:$8 sps:$4 sm:$0xff]  }
 0x422   :  { %1797 = vmatprep.subr.bf16.mxu1 %v5564_v2  ;;  %v5705_v2 = vld [vmem:[#allocation2 + $0x5c4] ss:$8 sps:$4 sm:$0xff]   ;;  %3211 = vmatpush1.bf16.msra.mxu0 %v5700_v1  ;;  %v5649_v1 = vld [vmem:[#allocation4 + $0x548] ss:$16 sps:$4 sm:$0xff]  }
 0x423   :  { %3212 = vmatprep.subr.bf16.mxu0 %v5705_v2  ;;  %v5654_v2 = vld [vmem:[#allocation4 + $0x56c] ss:$16 sps:$4 sm:$0xff]  }
 0x425   :  { %1798 = vmatpush1.bf16.msra.mxu1 %v5562_v5  ;;  %v5612_v5 = vld [vmem:[#allocation4 + $0x3ac] ss:$16 sps:$4 sm:$0xff]  }
 0x426   :  { %1799 = vmatprep.subr.bf16.mxu1 %v5570_v9  ;;  %v5703_v9 = vld [vmem:[#allocation2 + $0x5c0] ss:$8 sps:$4 sm:$0xff]  }
 0x427   :  { %3213 = vmatpush1.bf16.msra.mxu0 %v5703_v9  ;;  %v5652_v9 = vld [vmem:[#allocation4 + $0x568] ss:$16 sps:$4 sm:$0xff]  }
 0x428   :  { %3214 = vmatprep.subr.bf16.mxu0 %v5708_v10  ;;  %v5657_v10 = vld [vmem:[#allocation4 + $0x58c] ss:$16 sps:$4 sm:$0xff]  }
 0x429   :  { %1800 = vmatpush1.bf16.msra.mxu1 %v5568_v33  ;;  %v5610_v33 = vld [vmem:[#allocation4 + $0x3a8] ss:$16 sps:$4 sm:$0xff]  }
 0x42a   :  { %2693 = vmatprep.subr.bf16.mxu1 %v5573_v11  ;;  %v5615_v11 = vld [vmem:[#allocation4 + $0x3cc] ss:$16 sps:$4 sm:$0xff]  }
 0x42b   :  { %3215 = vmatpush1.bf16.msra.mxu0 %v5706_v12  ;;  %v5655_v12 = vld [vmem:[#allocation4 + $0x588] ss:$16 sps:$4 sm:$0xff]  }
 0x42c   :  { %1802 = vmatmul.mubr.bf16.vlgmr.msra.gmra.mrb[12].mxu1 %v1329_v7  ;;  %v5618_v7 = vld [vmem:[#allocation4 + $0x3ec] ss:$16 sps:$4 sm:$0xff]   ;;  %3216 = vmatprep.subr.bf16.mxu0 %v5711_v29  ;;  %v5748_v29 = vld [vmem:[#allocation2 + $0x6b0] ss:$8 sps:$4 sm:$0xff]  }
 0x42d   :  { %2694 = vmatpush1.bf16.msra.mxu1 %v5571_v14  ;;  %2725 = vmatprep.mubr.bf16.mxu1 %v6171_v28  ;;  %v5585_v28 = vld [vmem:[#allocation4 + $0x28c] ss:$16 sps:$4 sm:$0xff]   ;;  %v5613_v14 = vld [vmem:[#allocation4 + $0x3c8] ss:$16 sps:$4 sm:$0xff]  }
 0x42e   :  { %2695 = vmatprep.subr.bf16.mxu1 %v5576_v15  ;;  %v5616_v15 = vld [vmem:[#allocation4 + $0x3e8] ss:$16 sps:$4 sm:$0xff]  }
 0x431   :  { %2696 = vmatpush1.bf16.msra.mxu1 %v5574_v13  ;;  %v5624_v13 = vld [vmem:[#allocation4 + $0x42c] ss:$16 sps:$4 sm:$0xff]  }
 0x432   :  { %2697 = vmatprep.subr.bf16.mxu1 %v5579_v19  ;;  %v5627_v19 = vld [vmem:[#allocation4 + $0x44c] ss:$16 sps:$4 sm:$0xff]  }
 0x435   :  { %2698 = vmatpush1.bf16.msra.mxu1 %v5577_v22  ;;  %v5628_v22 = vld [vmem:[#allocation4 + $0x468] ss:$16 sps:$4 sm:$0xff]  }
 0x436   :  { %2699 = vmatprep.subr.bf16.mxu1 %v5582_v23  ;;  %v5633_v23 = vld [vmem:[#allocation4 + $0x48c] ss:$16 sps:$4 sm:$0xff]  }
 0x439   :  { %2700 = vmatpush1.bf16.msra.mxu1 %v5580_v26  ;;  %v1954_v26 = vrot.slane %v6214_v25, %v6157_v34 }
 0x43a   :  { %2701 = vmatprep.subr.bf16.mxu1 %v5585_v28  ;;  %v1958_v28 = vrot.slane %v6214_v25, %v6160_v36 }
 0x43d   :  { %2702 = vmatpush1.bf16.msra.mxu1 %v5583_v30 }
 0x43e   :  { %2703 = vmatprep.subr.bf16.mxu1 %v5588_v31  ;;  %v5709_v31 = vld [vmem:[#allocation2 + $0x5e0] ss:$8 sps:$4 sm:$0xff]  }
 0x43f   :  { %3217 = vmatpush1.bf16.msra.mxu0 %v5709_v31  ;;  %v5751_v31 = vld [vmem:[#allocation2 + $0x6c0] ss:$8 sps:$4 sm:$0xff]  }
 0x440   :  { %3218 = vmatprep.subr.bf16.mxu0 %v5714_v44 }
 0x441   :  { %2704 = vmatpush1.bf16.msra.mxu1 %v5586_v38  ;;  %v5637_v38 = vld [vmem:[#allocation4 + $0x4c8] ss:$16 sps:$4 sm:$0xff]  }
 0x442   :  { %2705 = vmatprep.subr.bf16.mxu1 %v5591_v39  ;;  %v5642_v39 = vld [vmem:[#allocation4 + $0x4ec] ss:$16 sps:$4 sm:$0xff]  }
 0x445   :  { %2706 = vmatpush1.bf16.msra.mxu1 %v5589_v42 }
 0x446   :  { %2707 = vmatprep.subr.bf16.mxu1 %v5594_v43 }
 0x449   :  { %2708 = vmatpush1.bf16.msra.mxu1 %v5592_v46  ;;  %v5712_v46 = vld [vmem:[#allocation2 + $0x5f0] ss:$8 sps:$4 sm:$0xff]  }
 0x44a   :  { %2709 = vmatprep.subr.bf16.mxu1 %v5597_v47  ;;  %3219 = vmatpush1.bf16.msra.mxu0 %v5712_v46  ;;  %v5757_v46 = vld [vmem:[#allocation2 + $0x6e0] ss:$8 sps:$4 sm:$0xff]  }
 0x44b   :  { %3229 = vmatprep.subr.bf16.mxu0 %v5717_v48  ;;  %v5762_v48 = vld [vmem:[#allocation2 + $0x6f4] ss:$8 sps:$4 sm:$0xff]  }
 0x44d   :  { %2710 = vmatpush1.bf16.msra.mxu1 %v5595_v50 }
 0x44e   :  { %2711 = vmatprep.subr.bf16.mxu1 %v5600_v51 }
 0x451   :  { %2712 = vmatpush1.bf16.msra.mxu1 %v5598_v54  ;;  %v5715_v54 = vld [vmem:[#allocation2 + $0x600] ss:$8 sps:$4 sm:$0xff]  }
 0x452   :  { %2713 = vmatprep.subr.bf16.mxu1 %v5603_v55  ;;  %v5720_v55 = vld [vmem:[#allocation2 + $0x614] ss:$8 sps:$4 sm:$0xff]  }
 0x455   :  { %2714 = vmatpush1.bf16.msra.mxu1 %v5601_v58  ;;  %v5718_v58 = vld [vmem:[#allocation2 + $0x610] ss:$8 sps:$4 sm:$0xff]  }
 0x456   :  { %2715 = vmatprep.subr.bf16.mxu1 %v5606_v59  ;;  %v5723_v59 = vld [vmem:[#allocation2 + $0x624] ss:$8 sps:$4 sm:$0xff]  }
 0x459   :  { %2716 = vmatpush1.bf16.msra.mxu1 %v5604_v63  ;;  %v5721_v63 = vld [vmem:[#allocation2 + $0x620] ss:$8 sps:$4 sm:$0xff]  }
 0x45a   :  { %2717 = vmatprep.subr.bf16.mxu1 %v5609_v0  ;;  %v5726_v0 = vld [vmem:[#allocation2 + $0x634] ss:$8 sps:$4 sm:$0xff]  }
 0x45d   :  { %2718 = vmatpush1.bf16.msra.mxu1 %v5607_v3  ;;  %v5724_v3 = vld [vmem:[#allocation2 + $0x630] ss:$8 sps:$4 sm:$0xff]  }
 0x45e   :  { %2719 = vmatprep.subr.bf16.mxu1 %v5612_v5  ;;  %v5729_v5 = vld [vmem:[#allocation2 + $0x644] ss:$8 sps:$4 sm:$0xff]  }
 0x461   :  { %2720 = vmatpush1.bf16.msra.mxu1 %v5610_v33  ;;  %v5727_v33 = vld [vmem:[#allocation2 + $0x640] ss:$8 sps:$4 sm:$0xff]  }
 0x462   :  { %2721 = vmatprep.subr.bf16.mxu1 %v5615_v11  ;;  %v2686_v30 = vpop.f32.mrb[8].mxu0  ;;  %v5732_v11 = vld [vmem:[#allocation2 + $0x654] ss:$8 sps:$4 sm:$0xff]  }
 0x463   :  { %v5102_v35 = vadd.f32 %v2686_v30, %v1954_v26  ;;  %v2688_v37 = vpop.f32.mrb[9].mxu0  ;;  %v5742_v26 = vld [vmem:[#allocation2 + $0x690] ss:$8 sps:$4 sm:$0xff]   ;;  %v5753_v30 = vld [vmem:[#allocation2 + $0x6c4] ss:$8 sps:$4 sm:$0xff]  }
 0x464   :  { %v5103_v40 = vadd.f32 %v2688_v37, %v1958_v28  ;;  %v2690_v41 = vpop.f32.mrb[10].mxu0  ;;  %v5745_v28 = vld [vmem:[#allocation2 + $0x6a0] ss:$8 sps:$4 sm:$0xff]   ;;  %v5754_v37 = vld [vmem:[#allocation2 + $0x6d0] ss:$8 sps:$4 sm:$0xff]  }
 0x465   :  { %2722 = vmatpush1.bf16.msra.mxu1 %v5613_v14  ;;  %vm2775_vm10 = vcmp.gt.f32.partialorder %v5102_v35, 0.0  ;;  %v2779_v42 = vmul.f32 0.2, %v5102_v35  ;;  %v2691_v43 = vpop.f32.mrb[11].mxu0  ;;  %v5660_v14 = vld [vmem:[#allocation4 + $0x5ac] ss:$16 sps:$4 sm:$0xff]  }
 0x466   :  { %2723 = vmatprep.subr.bf16.mxu1 %v5618_v7  ;;  %vm2776_vm11 = vcmp.gt.f32.partialorder %v5103_v40, 0.0  ;;  %v2780_v45 = vmul.f32 0.2, %v5103_v40  ;;  %v5730_v7 = vld [vmem:[#allocation2 + $0x650] ss:$8 sps:$4 sm:$0xff]  }
 0x467   :  { %v2783_v47 = vsel %vm2775_vm10, %v5102_v35, %v2779_v42  ;;  %v5756_v35 = vld [vmem:[#allocation2 + $0x6d4] ss:$8 sps:$4 sm:$0xff]   ;;  %v5759_v43 = vld [vmem:[#allocation2 + $0x6e4] ss:$8 sps:$4 sm:$0xff]  }
 0x468   :  { %v2787_v50 = vpack.c.bf16 %v2783_v47, %v2783_v47  ;;  %v2784_v51 = vsel %vm2776_vm11, %v5103_v40, %v2780_v45 }
 0x469   :  { %2724 = vmatpush1.bf16.msra.mxu1 %v5616_v15  ;;  %v2788_v53 = vpack.c.bf16 %v2784_v51, %v2784_v51  ;;  %v5735_v15 = vld [vmem:[#allocation2 + $0x664] ss:$8 sps:$4 sm:$0xff]  }
 0x46a   :  { %2734 = vmatprep.subr.bf16.mxu1 %v5621_v16  ;;  %v5658_v16 = vld [vmem:[#allocation4 + $0x5a8] ss:$16 sps:$4 sm:$0xff]   ;;  %v5765_v51 = vld [vmem:[#allocation2 + $0x704] ss:$8 sps:$4 sm:$0xff]  }
 0x46b   :  { %3220 = vmatprep.mubr.bf16.mxu0 %v2788_v53  ;;  %v5766_v53 = vld [vmem:[#allocation2 + $0x710] ss:$8 sps:$4 sm:$0xff]  }
 0x46c   :  { %2726 = vmatmul.mubr.bf16.vlgmr.msra.gmra.mrb[16].mxu1 %v6176_v32  ;;  %v5636_v32 = vld [vmem:[#allocation4 + $0x4ac] ss:$16 sps:$4 sm:$0xff]   ;;  %3221 = vmatmul.mubr.bf16.vlgmr.msra.gmra.mrb[12].mxu0 %v2787_v50  ;;  %v5763_v50 = vld [vmem:[#allocation2 + $0x700] ss:$8 sps:$4 sm:$0xff]  }
 0x46d   :  { %2735 = vmatpush1.bf16.msra.mxu1 %v5619_v17  ;;  %2766 = vmatprep.mubr.bf16.mxu1 %v6183_v4  ;;  %v5634_v4 = vld [vmem:[#allocation4 + $0x4a8] ss:$16 sps:$4 sm:$0xff]   ;;  %v5663_v17 = vld [vmem:[#allocation4 + $0x5cc] ss:$16 sps:$4 sm:$0xff]  }
 0x46e   :  { %2736 = vmatprep.subr.bf16.mxu1 %v5624_v13  ;;  %3230 = vmatpush1.bf16.msra.mxu0 %v5715_v54  ;;  %v5733_v13 = vld [vmem:[#allocation2 + $0x660] ss:$8 sps:$4 sm:$0xff]   ;;  %v5771_v54 = vld [vmem:[#allocation2 + $0x724] ss:$8 sps:$4 sm:$0xff]  }
 0x46f   :  { %3231 = vmatprep.subr.bf16.mxu0 %v5720_v55  ;;  %v5769_v55 = vld [vmem:[#allocation2 + $0x720] ss:$8 sps:$4 sm:$0xff]  }
 0x471   :  { %2737 = vmatpush1.bf16.msra.mxu1 %v5622_v18  ;;  %v5738_v18 = vld [vmem:[#allocation2 + $0x674] ss:$8 sps:$4 sm:$0xff]  }
 0x472   :  { %2738 = vmatprep.subr.bf16.mxu1 %v5627_v19  ;;  %3232 = vmatpush1.bf16.msra.mxu0 %v5718_v58  ;;  %v5661_v19 = vld [vmem:[#allocation4 + $0x5c8] ss:$16 sps:$4 sm:$0xff]   ;;  %v5777_v58 = vld [vmem:[#allocation2 + $0x744] ss:$8 sps:$4 sm:$0xff]  }
 0x473   :  { %3233 = vmatprep.subr.bf16.mxu0 %v5723_v59  ;;  %v5775_v59 = vld [vmem:[#allocation2 + $0x740] ss:$8 sps:$4 sm:$0xff]  }
 0x475   :  { %2739 = vmatpush1.bf16.msra.mxu1 %v5625_v20  ;;  %v5666_v20 = vld [vmem:[#allocation4 + $0x5ec] ss:$16 sps:$4 sm:$0xff]  }
 0x476   :  { %2740 = vmatprep.subr.bf16.mxu1 %v5630_v21  ;;  %3234 = vmatpush1.bf16.msra.mxu0 %v5721_v63  ;;  %v5736_v21 = vld [vmem:[#allocation2 + $0x670] ss:$8 sps:$4 sm:$0xff]   ;;  %v5783_v63 = vld [vmem:[#allocation2 + $0x764] ss:$8 sps:$4 sm:$0xff]  }
 0x477   :  { %3235 = vmatprep.subr.bf16.mxu0 %v5726_v0  ;;  %v5781_v0 = vld [vmem:[#allocation2 + $0x760] ss:$8 sps:$4 sm:$0xff]  }
 0x479   :  { %2741 = vmatpush1.bf16.msra.mxu1 %v5628_v22  ;;  %v5741_v22 = vld [vmem:[#allocation2 + $0x684] ss:$8 sps:$4 sm:$0xff]  }
 0x47a   :  { %2742 = vmatprep.subr.bf16.mxu1 %v5633_v23  ;;  %3236 = vmatpush1.bf16.msra.mxu0 %v5724_v3  ;;  %v5664_v23 = vld [vmem:[#allocation4 + $0x5e8] ss:$16 sps:$4 sm:$0xff]   ;;  %v5789_v3 = vld [vmem:[#allocation2 + $0x784] ss:$8 sps:$4 sm:$0xff]  }
 0x47b   :  { %3237 = vmatprep.subr.bf16.mxu0 %v5729_v5  ;;  %v5787_v5 = vld [vmem:[#allocation2 + $0x780] ss:$8 sps:$4 sm:$0xff]  }
 0x47d   :  { %2743 = vmatpush1.bf16.msra.mxu1 %v5631_v24  ;;  %v5739_v24 = vld [vmem:[#allocation2 + $0x680] ss:$8 sps:$4 sm:$0xff]  }
 0x47e   :  { %2744 = vmatprep.subr.bf16.mxu1 %v5636_v32  ;;  %3238 = vmatpush1.bf16.msra.mxu0 %v5727_v33  ;;  %v5744_v32 = vld [vmem:[#allocation2 + $0x694] ss:$8 sps:$4 sm:$0xff]   ;;  %v5795_v33 = vld [vmem:[#allocation2 + $0x7a4] ss:$8 sps:$4 sm:$0xff]  }
 0x47f   :  { %3239 = vmatprep.subr.bf16.mxu0 %v5732_v11  ;;  %v5793_v11 = vld [vmem:[#allocation2 + $0x7a0] ss:$8 sps:$4 sm:$0xff]  }
 0x481   :  { %2745 = vmatpush1.bf16.msra.mxu1 %v5634_v4  ;;  %v5747_v4 = vld [vmem:[#allocation2 + $0x6a4] ss:$8 sps:$4 sm:$0xff]  }
 0x482   :  { %2746 = vmatprep.subr.bf16.mxu1 %v5639_v27  ;;  %3240 = vmatpush1.bf16.msra.mxu0 %v5730_v7  ;;  %v5750_v27 = vld [vmem:[#allocation2 + $0x6b4] ss:$8 sps:$4 sm:$0xff]   ;;  %v5801_v7 = vld [vmem:[#allocation2 + $0x7c4] ss:$8 sps:$4 sm:$0xff]  }
 0x483   :  { %3241 = vmatprep.subr.bf16.mxu0 %v5735_v15  ;;  %v5799_v15 = vld [vmem:[#allocation2 + $0x7c0] ss:$8 sps:$4 sm:$0xff]  }
 0x485   :  { %2747 = vmatpush1.bf16.msra.mxu1 %v5637_v38  ;;  %v1396_v38 = vld [vmem:[#allocation6 + $0x4] ss:$8 sm:$0x3] }
 0x486   :  { %2748 = vmatprep.subr.bf16.mxu1 %v5642_v39  ;;  %3242 = vmatpush1.bf16.msra.mxu0 %v5733_v13  ;;  %v1401_v39 = vrot.slane %v1396_v38, %v6157_v34  ;;  %v1962_v13 = vrot.slane %v6214_v25, %v6206_v61 }
 0x487   :  { %3243 = vmatprep.subr.bf16.mxu0 %v5738_v18  ;;  %v1966_v18 = vrot.slane %v6214_v25, %v6195_v8  ;;  %v5810_v25 = vld [vmem:[#allocation2 + $0x7f4] ss:$8 sps:$4 sm:$0xff]  }
 0x489   :  { %2749 = vmatpush1.bf16.msra.mxu1 %v5640_v49  ;;  %v5760_v49 = vld [vmem:[#allocation2 + $0x6f0] ss:$8 sps:$4 sm:$0xff]  }
 0x48a   :  { %2750 = vmatprep.subr.bf16.mxu1 %v5645_v52  ;;  %3244 = vmatpush1.bf16.msra.mxu0 %v5736_v21  ;;  %v5768_v52 = vld [vmem:[#allocation2 + $0x714] ss:$8 sps:$4 sm:$0xff]  }
 0x48b   :  { %3245 = vmatprep.subr.bf16.mxu0 %v5741_v22 }
 0x48d   :  { %2751 = vmatpush1.bf16.msra.mxu1 %v5643_v56  ;;  %v5774_v56 = vld [vmem:[#allocation2 + $0x734] ss:$8 sps:$4 sm:$0xff]  }
 0x48e   :  { %2752 = vmatprep.subr.bf16.mxu1 %v5648_v57  ;;  %3246 = vmatpush1.bf16.msra.mxu0 %v5739_v24  ;;  %v5772_v57 = vld [vmem:[#allocation2 + $0x730] ss:$8 sps:$4 sm:$0xff]  }
 0x48f   :  { %3247 = vmatprep.subr.bf16.mxu0 %v5744_v32 }
 0x491   :  { %2753 = vmatpush1.bf16.msra.mxu1 %v5646_v60  ;;  %v5780_v60 = vld [vmem:[#allocation2 + $0x754] ss:$8 sps:$4 sm:$0xff]  }
 0x492   :  { %2754 = vmatprep.subr.bf16.mxu1 %v5651_v62  ;;  %3248 = vmatpush1.bf16.msra.mxu0 %v5742_v26  ;;  %v5778_v62 = vld [vmem:[#allocation2 + $0x750] ss:$8 sps:$4 sm:$0xff]  }
 0x493   :  { %3249 = vmatprep.subr.bf16.mxu0 %v5747_v4 }
 0x495   :  { %2755 = vmatpush1.bf16.msra.mxu1 %v5649_v1  ;;  %v5786_v1 = vld [vmem:[#allocation2 + $0x774] ss:$8 sps:$4 sm:$0xff]  }
 0x496   :  { %2756 = vmatprep.subr.bf16.mxu1 %v5654_v2  ;;  %3250 = vmatpush1.bf16.msra.mxu0 %v5745_v28  ;;  %v5784_v2 = vld [vmem:[#allocation2 + $0x770] ss:$8 sps:$4 sm:$0xff]  }
 0x497   :  { %3251 = vmatprep.subr.bf16.mxu0 %v5750_v27 }
 0x499   :  { %2757 = vmatpush1.bf16.msra.mxu1 %v5652_v9  ;;  %v5792_v9 = vld [vmem:[#allocation2 + $0x794] ss:$8 sps:$4 sm:$0xff]  }
 0x49a   :  { %2758 = vmatprep.subr.bf16.mxu1 %v5657_v10  ;;  %3252 = vmatpush1.bf16.msra.mxu0 %v5748_v29  ;;  %v5790_v10 = vld [vmem:[#allocation2 + $0x790] ss:$8 sps:$4 sm:$0xff]  }
 0x49b   :  { %3253 = vmatprep.subr.bf16.mxu0 %v5753_v30  ;;  %v5807_v30 = vld [vmem:[#allocation2 + $0x7e4] ss:$8 sps:$4 sm:$0xff]  }
 0x49d   :  { %2759 = vmatpush1.bf16.msra.mxu1 %v5655_v12  ;;  %v5798_v12 = vld [vmem:[#allocation2 + $0x7b4] ss:$8 sps:$4 sm:$0xff]  }
 0x49e   :  { %2760 = vmatprep.subr.bf16.mxu1 %v5660_v14  ;;  %3254 = vmatpush1.bf16.msra.mxu0 %v5751_v31  ;;  %v5796_v14 = vld [vmem:[#allocation2 + $0x7b0] ss:$8 sps:$4 sm:$0xff]   ;;  %v5805_v31 = vld [vmem:[#allocation2 + $0x7e0] ss:$8 sps:$4 sm:$0xff]  }
 0x49f   :  { %3255 = vmatprep.subr.bf16.mxu0 %v5756_v35  ;;  %v5808_v35 = vld [vmem:[#allocation2 + $0x7f0] ss:$8 sps:$4 sm:$0xff]  }
 0x4a1   :  { %2761 = vmatpush1.bf16.msra.mxu1 %v5658_v16  ;;  %v5804_v16 = vld [vmem:[#allocation2 + $0x7d4] ss:$8 sps:$4 sm:$0xff]  }
 0x4a2   :  { %2762 = vmatprep.subr.bf16.mxu1 %v5663_v17  ;;  %3256 = vmatpush1.bf16.msra.mxu0 %v5754_v37  ;;  %v5802_v17 = vld [vmem:[#allocation2 + $0x7d0] ss:$8 sps:$4 sm:$0xff]  }
 0x4a3   :  { %3257 = vmatprep.subr.bf16.mxu0 %v5759_v43  ;;  %v5811_v37 = vld [vmem:[#allocation4 + $0x600] ss:$16 sps:$4 sm:$0xff]   ;;  %v5831_v43 = vld [vmem:[#allocation4 + $0x664] ss:$16 sps:$4 sm:$0xff]  }
 0x4a5   :  { %2763 = vmatpush1.bf16.msra.mxu1 %v5661_v19 }
 0x4a6   :  { %2764 = vmatprep.subr.bf16.mxu1 %v5666_v20  ;;  %3258 = vmatpush1.bf16.msra.mxu0 %v5757_v46  ;;  %v5835_v46 = vld [vmem:[#allocation4 + $0x680] ss:$16 sps:$4 sm:$0xff]  }
 0x4a7   :  { %3259 = vmatprep.subr.bf16.mxu0 %v5762_v48  ;;  %v5841_v48 = vld [vmem:[#allocation4 + $0x6a0] ss:$16 sps:$4 sm:$0xff]  }
 0x4a9   :  { %2765 = vmatpush1.bf16.msra.mxu1 %v5664_v23 }
 0x4aa   :  { %3260 = vmatpush1.bf16.msra.mxu0 %v5760_v49  ;;  %3483 = vmatprep.subr.bf16.mxu1 %v5765_v51  ;;  %v5849_v49 = vld [vmem:[#allocation4 + $0x6c4] ss:$16 sps:$4 sm:$0xff]  }
 0x4ab   :  { %v5855_v51 = vld [vmem:[#allocation4 + $0x6e4] ss:$16 sps:$4 sm:$0xff]  }
 0x4ac   :  { %2767 = vmatmul.mubr.bf16.vlgmr.msra.gmra.mrb[16].mxu1 %v6188_v6  ;;  %v1405_v6 = vrot.slane %v1396_v38, %v6160_v36  ;;  %v5813_v38 = vld [vmem:[#allocation4 + $0x604] ss:$16 sps:$4 sm:$0xff]  }
 0x4ad   :  { %3484 = vmatpush1.bf16.msra.mxu1 %v5763_v50  ;;  %3939 = vmatprep.subr.bf16.mxu0 %v5813_v38  ;;  %v5847_v50 = vld [vmem:[#allocation4 + $0x6c0] ss:$16 sps:$4 sm:$0xff]   ;;  %v5870_v38 = vld [vmem:[#allocation4 + $0x72c] ss:$16 sps:$4 sm:$0xff]  }
 0x4ae   :  { %3485 = vmatprep.subr.bf16.mxu1 %v5768_v52  ;;  %v5853_v52 = vld [vmem:[#allocation4 + $0x6e0] ss:$16 sps:$4 sm:$0xff]  }
 0x4b1   :  { %3486 = vmatpush1.bf16.msra.mxu1 %v5766_v53  ;;  %v5861_v53 = vld [vmem:[#allocation4 + $0x704] ss:$16 sps:$4 sm:$0xff]  }
 0x4b2   :  { %3487 = vmatprep.subr.bf16.mxu1 %v5771_v54  ;;  %v5859_v54 = vld [vmem:[#allocation4 + $0x700] ss:$16 sps:$4 sm:$0xff]  }
 0x4b5   :  { %3488 = vmatpush1.bf16.msra.mxu1 %v5769_v55  ;;  %v5867_v55 = vld [vmem:[#allocation4 + $0x724] ss:$16 sps:$4 sm:$0xff]  }
 0x4b6   :  { %3489 = vmatprep.subr.bf16.mxu1 %v5774_v56  ;;  %v5865_v56 = vld [vmem:[#allocation4 + $0x720] ss:$16 sps:$4 sm:$0xff]  }
 0x4b9   :  { %3490 = vmatpush1.bf16.msra.mxu1 %v5772_v57  ;;  %v5873_v57 = vld [vmem:[#allocation4 + $0x744] ss:$16 sps:$4 sm:$0xff]  }
 0x4ba   :  { %3491 = vmatprep.subr.bf16.mxu1 %v5777_v58  ;;  %v5871_v58 = vld [vmem:[#allocation4 + $0x740] ss:$16 sps:$4 sm:$0xff]  }
 0x4bd   :  { %3492 = vmatpush1.bf16.msra.mxu1 %v5775_v59  ;;  %v5879_v59 = vld [vmem:[#allocation4 + $0x764] ss:$16 sps:$4 sm:$0xff]  }
 0x4be   :  { %3493 = vmatprep.subr.bf16.mxu1 %v5780_v60  ;;  %v5877_v60 = vld [vmem:[#allocation4 + $0x760] ss:$16 sps:$4 sm:$0xff]  }
 0x4c1   :  { %3494 = vmatpush1.bf16.msra.mxu1 %v5778_v62  ;;  %v5885_v62 = vld [vmem:[#allocation4 + $0x784] ss:$16 sps:$4 sm:$0xff]  }
 0x4c2   :  { %3495 = vmatprep.subr.bf16.mxu1 %v5783_v63  ;;  %v5883_v63 = vld [vmem:[#allocation4 + $0x780] ss:$16 sps:$4 sm:$0xff]  }
 0x4c5   :  { %3496 = vmatpush1.bf16.msra.mxu1 %v5781_v0  ;;  %v5891_v0 = vld [vmem:[#allocation4 + $0x7a4] ss:$16 sps:$4 sm:$0xff]  }
 0x4c6   :  { %3497 = vmatprep.subr.bf16.mxu1 %v5786_v1  ;;  %v5889_v1 = vld [vmem:[#allocation4 + $0x7a0] ss:$16 sps:$4 sm:$0xff]  }
 0x4c9   :  { %3498 = vmatpush1.bf16.msra.mxu1 %v5784_v2  ;;  %v2856_v2 = vld [vmem:[#allocation6 + $0x6] ss:$8 sm:$0x3] }
 0x4ca   :  { %3499 = vmatprep.subr.bf16.mxu1 %v5789_v3  ;;  %v2861_v3 = vrot.slane %v2856_v2, %v6157_v34 }
 0x4cd   :  { %3500 = vmatpush1.bf16.msra.mxu1 %v5787_v5  ;;  %v2865_v5 = vrot.slane %v2856_v2, %v6160_v36 }
 0x4ce   :  { %3501 = vmatprep.subr.bf16.mxu1 %v5792_v9 }
 0x4d1   :  { %3502 = vmatpush1.bf16.msra.mxu1 %v5790_v10 }
 0x4d2   :  { %3503 = vmatprep.subr.bf16.mxu1 %v5795_v33 }
 0x4d5   :  { %3504 = vmatpush1.bf16.msra.mxu1 %v5793_v11 }
 0x4d6   :  { %3505 = vmatprep.subr.bf16.mxu1 %v5798_v12 }
 0x4d9   :  { %3506 = vmatpush1.bf16.msra.mxu1 %v5796_v14 }
 0x4da   :  { %3507 = vmatprep.subr.bf16.mxu1 %v5801_v7 }
 0x4dd   :  { %3508 = vmatpush1.bf16.msra.mxu1 %v5799_v15 }
 0x4de   :  { %3509 = vmatprep.subr.bf16.mxu1 %v5804_v16 }
 0x4e1   :  { %3510 = vmatpush1.bf16.msra.mxu1 %v5802_v17 }
 0x4e2   :  { %3511 = vmatprep.subr.bf16.mxu1 %v5807_v30  ;;  %v5850_v30 = vld [vmem:[#allocation4 + $0x6c8] ss:$16 sps:$4 sm:$0xff]  }
 0x4e5   :  { %3512 = vmatpush1.bf16.msra.mxu1 %v5805_v31  ;;  %v5858_v31 = vld [vmem:[#allocation4 + $0x6ec] ss:$16 sps:$4 sm:$0xff]  }
 0x4e6   :  { %3513 = vmatprep.subr.bf16.mxu1 %v5810_v25  ;;  %v5856_v25 = vld [vmem:[#allocation4 + $0x6e8] ss:$16 sps:$4 sm:$0xff]  }
 0x4e9   :  { %3514 = vmatpush1.bf16.msra.mxu1 %v5808_v35  ;;  %v5864_v35 = vld [vmem:[#allocation4 + $0x70c] ss:$16 sps:$4 sm:$0xff]  }
 0x4ff   :  { %v1803_v40 = vpop.f32.mrb[12].mxu1 }
 0x500   :  { %v5100_v41 = vadd.f32 %v1803_v40, %v1401_v39  ;;  %v1805_v42 = vpop.f32.mrb[13].mxu1  ;;  %v5816_v39 = vld [vmem:[#allocation4 + $0x60c] ss:$16 sps:$4 sm:$0xff]   ;;  %v5817_v40 = vld [vmem:[#allocation4 + $0x620] ss:$16 sps:$4 sm:$0xff]  }
 0x501   :  { %v5101_v44 = vadd.f32 %v1805_v42, %v1405_v6  ;;  %v1807_v45 = vpop.f32.mrb[14].mxu1  ;;  %v5819_v6 = vld [vmem:[#allocation4 + $0x624] ss:$16 sps:$4 sm:$0xff]   ;;  %3980 = vmatprep.subr.bf16.mxu1 %v5816_v39  ;;  %v5823_v42 = vld [vmem:[#allocation4 + $0x640] ss:$16 sps:$4 sm:$0xff]  }
 0x502   :  { %1810 = vst [vmem:[%s6263_s5] sm:$0xff] %v5100_v41  ;;  %v1808_v47 = vpop.f32.mrb[15].mxu1  ;;  %v5825_v41 = vld [vmem:[#allocation4 + $0x644] ss:$16 sps:$4 sm:$0xff]   ;;  %v5868_v39 = vld [vmem:[#allocation4 + $0x728] ss:$16 sps:$4 sm:$0xff]  }
 0x503   :  { %1811 = vst [vmem:[%s6263_s5 + $0x8] sm:$0xff] %v5101_v44  ;;  %v5829_v44 = vld [vmem:[#allocation4 + $0x660] ss:$16 sps:$4 sm:$0xff]   ;;  %v5837_v45 = vld [vmem:[#allocation4 + $0x684] ss:$16 sps:$4 sm:$0xff]  }
 0x504   :  { %v5843_v47 = vld [vmem:[#allocation4 + $0x6a4] ss:$16 sps:$4 sm:$0xff]  }
 0x57f   :  { %v2768_v19 = vpop.f32.mrb[16].mxu1 }
 0x580   :  { %v5104_v20 = vadd.f32 %v2768_v19, %v1962_v13  ;;  %v2770_v21 = vpop.f32.mrb[17].mxu1 }
 0x581   :  { %v5105_v22 = vadd.f32 %v2770_v21, %v1966_v18  ;;  %v2772_v23 = vpop.f32.mrb[18].mxu1  ;;  %v5814_v18 = vld [vmem:[#allocation4 + $0x608] ss:$16 sps:$4 sm:$0xff]  }
 0x582   :  { %vm2777_vm12 = vcmp.gt.f32.partialorder %v5104_v20, 0.0  ;;  %v2781_v24 = vmul.f32 0.2, %v5104_v20  ;;  %v2773_v32 = vpop.f32.mrb[19].mxu1  ;;  %v5820_v21 = vld [vmem:[#allocation4 + $0x628] ss:$16 sps:$4 sm:$0xff]  }
 0x583   :  { %vm2778_vm13 = vcmp.gt.f32.partialorder %v5105_v22, 0.0  ;;  %v2782_v26 = vmul.f32 0.2, %v5105_v22  ;;  %v5826_v23 = vld [vmem:[#allocation4 + $0x648] ss:$16 sps:$4 sm:$0xff]  }
 0x584   :  { %v2785_v4 = vsel %vm2777_vm12, %v5104_v20, %v2781_v24  ;;  %v5822_v20 = vld [vmem:[#allocation4 + $0x62c] ss:$16 sps:$4 sm:$0xff]   ;;  %v5832_v32 = vld [vmem:[#allocation4 + $0x668] ss:$16 sps:$4 sm:$0xff]  }
 0x585   :  { %v2786_v28 = vsel %vm2778_vm13, %v5105_v22, %v2782_v26  ;;  %v2789_v29 = vpack.c.bf16 %v2785_v4, %v2785_v4  ;;  %v5828_v22 = vld [vmem:[#allocation4 + $0x64c] ss:$16 sps:$4 sm:$0xff]   ;;  %v5838_v4 = vld [vmem:[#allocation4 + $0x688] ss:$16 sps:$4 sm:$0xff]  }
 0x586   :  { %v2790_v27 = vpack.c.bf16 %v2786_v28, %v2786_v28  ;;  %v5834_v24 = vld [vmem:[#allocation4 + $0x66c] ss:$16 sps:$4 sm:$0xff]  }
 0x587   :  { %v5840_v26 = vld [vmem:[#allocation4 + $0x68c] ss:$16 sps:$4 sm:$0xff]  }
 0x588   :  { %3261 = vmatprep.mubr.bf16.mxu0 %v2790_v27  ;;  %v5846_v28 = vld [vmem:[#allocation4 + $0x6ac] ss:$16 sps:$4 sm:$0xff]   ;;  %v5844_v27 = vld [vmem:[#allocation4 + $0x6a8] ss:$16 sps:$4 sm:$0xff]  }
 0x589   :  { %3262 = vmatmul.mubr.bf16.vlgmr.msra.gmra.mrb[12].mxu0 %v2789_v29  ;;  %v5852_v29 = vld [vmem:[#allocation4 + $0x6cc] ss:$16 sps:$4 sm:$0xff]  }
 0x58a   :  { %3940 = vmatpush1.bf16.msra.mxu0 %v5811_v37  ;;  %v5862_v37 = vld [vmem:[#allocation4 + $0x708] ss:$16 sps:$4 sm:$0xff]  }
 0x58b   :  { %3941 = vmatprep.subr.bf16.mxu0 %v5819_v6  ;;  %v5876_v6 = vld [vmem:[#allocation4 + $0x74c] ss:$16 sps:$4 sm:$0xff]  }
 0x58e   :  { %3942 = vmatpush1.bf16.msra.mxu0 %v5817_v40  ;;  %v5874_v40 = vld [vmem:[#allocation4 + $0x748] ss:$16 sps:$4 sm:$0xff]  }
 0x58f   :  { %3943 = vmatprep.subr.bf16.mxu0 %v5825_v41  ;;  %v5882_v41 = vld [vmem:[#allocation4 + $0x76c] ss:$16 sps:$4 sm:$0xff]  }
 0x592   :  { %3944 = vmatpush1.bf16.msra.mxu0 %v5823_v42  ;;  %v5880_v42 = vld [vmem:[#allocation4 + $0x768] ss:$16 sps:$4 sm:$0xff]  }
 0x593   :  { %3945 = vmatprep.subr.bf16.mxu0 %v5831_v43  ;;  %v5888_v43 = vld [vmem:[#allocation4 + $0x78c] ss:$16 sps:$4 sm:$0xff]  }
 0x596   :  { %3946 = vmatpush1.bf16.msra.mxu0 %v5829_v44  ;;  %v5886_v44 = vld [vmem:[#allocation4 + $0x788] ss:$16 sps:$4 sm:$0xff]  }
 0x597   :  { %3947 = vmatprep.subr.bf16.mxu0 %v5837_v45  ;;  %v5894_v45 = vld [vmem:[#allocation4 + $0x7ac] ss:$16 sps:$4 sm:$0xff]  }
 0x59a   :  { %3948 = vmatpush1.bf16.msra.mxu0 %v5835_v46  ;;  %v5892_v46 = vld [vmem:[#allocation4 + $0x7a8] ss:$16 sps:$4 sm:$0xff]  }
 0x59b   :  { %3949 = vmatprep.subr.bf16.mxu0 %v5843_v47  ;;  %v5897_v47 = vld [vmem:[#allocation4 + $0x7c4] ss:$16 sps:$4 sm:$0xff]  }
 0x59e   :  { %3950 = vmatpush1.bf16.msra.mxu0 %v5841_v48  ;;  %v5900_v48 = vld [vmem:[#allocation4 + $0x7cc] ss:$16 sps:$4 sm:$0xff]  }
 0x59f   :  { %3951 = vmatprep.subr.bf16.mxu0 %v5849_v49  ;;  %v5895_v49 = vld [vmem:[#allocation4 + $0x7c0] ss:$16 sps:$4 sm:$0xff]  }
 0x5a2   :  { %3952 = vmatpush1.bf16.msra.mxu0 %v5847_v50  ;;  %v5898_v50 = vld [vmem:[#allocation4 + $0x7c8] ss:$16 sps:$4 sm:$0xff]  }
 0x5a3   :  { %3953 = vmatprep.subr.bf16.mxu0 %v5855_v51  ;;  %v5903_v51 = vld [vmem:[#allocation4 + $0x7e4] ss:$16 sps:$4 sm:$0xff]  }
 0x5a6   :  { %3954 = vmatpush1.bf16.msra.mxu0 %v5853_v52  ;;  %v5906_v52 = vld [vmem:[#allocation4 + $0x7ec] ss:$16 sps:$4 sm:$0xff]  }
 0x5a7   :  { %3955 = vmatprep.subr.bf16.mxu0 %v5861_v53  ;;  %v5901_v53 = vld [vmem:[#allocation4 + $0x7e0] ss:$16 sps:$4 sm:$0xff]  }
 0x5aa   :  { %3956 = vmatpush1.bf16.msra.mxu0 %v5859_v54  ;;  %v5904_v54 = vld [vmem:[#allocation4 + $0x7e8] ss:$16 sps:$4 sm:$0xff]  }
 0x5ab   :  { %3957 = vmatprep.subr.bf16.mxu0 %v5867_v55  ;;  %v5909_v55 = vld [vmem:[#allocation2 + $0x804] ss:$8 sps:$4 sm:$0xff]  }
 0x5ae   :  { %3958 = vmatpush1.bf16.msra.mxu0 %v5865_v56  ;;  %v3311_v56 = vld [vmem:[#allocation6 + $0x7] ss:$8 sm:$0x3] }
 0x5af   :  { %3959 = vmatprep.subr.bf16.mxu0 %v5873_v57  ;;  %v3316_v57 = vrot.slane %v3311_v56, %v6157_v34 }
 0x5b2   :  { %3960 = vmatpush1.bf16.msra.mxu0 %v5871_v58  ;;  %v3320_v58 = vrot.slane %v3311_v56, %v6160_v36 }
 0x5b3   :  { %3961 = vmatprep.subr.bf16.mxu0 %v5879_v59 }
 0x5b6   :  { %3962 = vmatpush1.bf16.msra.mxu0 %v5877_v60 }
 0x5b7   :  { %3963 = vmatprep.subr.bf16.mxu0 %v5885_v62 }
 0x5ba   :  { %3964 = vmatpush1.bf16.msra.mxu0 %v5883_v63 }
 0x5bb   :  { %3965 = vmatprep.subr.bf16.mxu0 %v5891_v0 }
 0x5be   :  { %3966 = vmatpush1.bf16.msra.mxu0 %v5889_v1 }
 0x5bf   :  { %3967 = vmatprep.subr.bf16.mxu0 %v5897_v47 }
 0x5c2   :  { %3968 = vmatpush1.bf16.msra.mxu0 %v5895_v49 }
 0x5c3   :  { %3969 = vmatprep.subr.bf16.mxu0 %v5903_v51 }
 0x5c6   :  { %3970 = vmatpush1.bf16.msra.mxu0 %v5901_v53 }
 0x5c7   :  { %4434 = vmatprep.subr.bf16.mxu0 %v5909_v55 }
 0x65c   :  { %v3263_v9 = vpop.f32.mrb[12].mxu0 }
 0x65d   :  { %v5106_v10 = vadd.f32 %v3263_v9, %v2861_v3  ;;  %v3265_v33 = vpop.f32.mrb[13].mxu0 }
 0x65e   :  { %v5107_v11 = vadd.f32 %v3265_v33, %v2865_v5  ;;  %v3267_v12 = vpop.f32.mrb[14].mxu0  ;;  %v5907_v33 = vld [vmem:[#allocation2 + $0x800] ss:$8 sps:$4 sm:$0xff]  }
 0x65f   :  { %vm3270_vm14 = vcmp.gt.f32.partialorder %v5106_v10, 0.0  ;;  %v3272_v14 = vmul.f32 0.2, %v5106_v10  ;;  %v3268_v7 = vpop.f32.mrb[15].mxu0  ;;  %v5912_v12 = vld [vmem:[#allocation2 + $0x814] ss:$8 sps:$4 sm:$0xff]  }
 0x660   :  { %vm3271_vm15 = vcmp.gt.f32.partialorder %v5107_v11, 0.0  ;;  %v3273_v15 = vmul.f32 0.2, %v5107_v11  ;;  %v5915_v7 = vld [vmem:[#allocation2 + $0x824] ss:$8 sps:$4 sm:$0xff]  }
 0x661   :  { %v3274_v16 = vsel %vm3270_vm14, %v5106_v10, %v3272_v14  ;;  %v5910_v14 = vld [vmem:[#allocation2 + $0x810] ss:$8 sps:$4 sm:$0xff]  }
 0x662   :  { %v3275_v17 = vsel %vm3271_vm15, %v5107_v11, %v3273_v15  ;;  %v3276_v19 = vpack.c.bf16 %v3274_v16, %v3274_v16  ;;  %v5913_v15 = vld [vmem:[#allocation2 + $0x820] ss:$8 sps:$4 sm:$0xff]   ;;  %v5918_v16 = vld [vmem:[#allocation2 + $0x834] ss:$8 sps:$4 sm:$0xff]  }
 0x663   :  { %v3277_v13 = vpack.c.bf16 %v3275_v17, %v3275_v17  ;;  %v5916_v17 = vld [vmem:[#allocation2 + $0x830] ss:$8 sps:$4 sm:$0xff]  }
 0x665   :  { %3515 = vmatprep.mubr.bf16.mxu1 %v3277_v13  ;;  %v5921_v13 = vld [vmem:[#allocation2 + $0x844] ss:$8 sps:$4 sm:$0xff]  }
 0x666   :  { %3516 = vmatmul.mubr.bf16.vlgmr.msra.gmra.mrb[20].mxu1 %v3276_v19  ;;  %v5924_v19 = vld [vmem:[#allocation2 + $0x854] ss:$8 sps:$4 sm:$0xff]  }
 0x667   :  { %3981 = vmatpush1.bf16.msra.mxu1 %v5814_v18  ;;  %v5919_v18 = vld [vmem:[#allocation2 + $0x840] ss:$8 sps:$4 sm:$0xff]  }
 0x668   :  { %3982 = vmatprep.subr.bf16.mxu1 %v5822_v20  ;;  %v5922_v20 = vld [vmem:[#allocation2 + $0x850] ss:$8 sps:$4 sm:$0xff]  }
 0x66b   :  { %3983 = vmatpush1.bf16.msra.mxu1 %v5820_v21  ;;  %v5927_v21 = vld [vmem:[#allocation2 + $0x864] ss:$8 sps:$4 sm:$0xff]  }
 0x66c   :  { %3984 = vmatprep.subr.bf16.mxu1 %v5828_v22  ;;  %v5925_v22 = vld [vmem:[#allocation2 + $0x860] ss:$8 sps:$4 sm:$0xff]  }
 0x66f   :  { %3985 = vmatpush1.bf16.msra.mxu1 %v5826_v23  ;;  %v5930_v23 = vld [vmem:[#allocation2 + $0x874] ss:$8 sps:$4 sm:$0xff]  }
 0x670   :  { %3986 = vmatprep.subr.bf16.mxu1 %v5834_v24  ;;  %v5928_v24 = vld [vmem:[#allocation2 + $0x870] ss:$8 sps:$4 sm:$0xff]  }
 0x673   :  { %3987 = vmatpush1.bf16.msra.mxu1 %v5832_v32  ;;  %v5933_v32 = vld [vmem:[#allocation2 + $0x884] ss:$8 sps:$4 sm:$0xff]  }
 0x674   :  { %3988 = vmatprep.subr.bf16.mxu1 %v5840_v26  ;;  %v5931_v26 = vld [vmem:[#allocation2 + $0x880] ss:$8 sps:$4 sm:$0xff]  }
 0x677   :  { %3989 = vmatpush1.bf16.msra.mxu1 %v5838_v4  ;;  %v5936_v4 = vld [vmem:[#allocation2 + $0x894] ss:$8 sps:$4 sm:$0xff]  }
 0x678   :  { %3990 = vmatprep.subr.bf16.mxu1 %v5846_v28  ;;  %v5934_v28 = vld [vmem:[#allocation2 + $0x890] ss:$8 sps:$4 sm:$0xff]  }
 0x67b   :  { %3991 = vmatpush1.bf16.msra.mxu1 %v5844_v27  ;;  %v5939_v27 = vld [vmem:[#allocation2 + $0x8a4] ss:$8 sps:$4 sm:$0xff]  }
 0x67c   :  { %3992 = vmatprep.subr.bf16.mxu1 %v5852_v29  ;;  %v5937_v29 = vld [vmem:[#allocation2 + $0x8a0] ss:$8 sps:$4 sm:$0xff]  }
 0x67f   :  { %3993 = vmatpush1.bf16.msra.mxu1 %v5850_v30  ;;  %v5942_v30 = vld [vmem:[#allocation2 + $0x8b4] ss:$8 sps:$4 sm:$0xff]  }
 0x680   :  { %3994 = vmatprep.subr.bf16.mxu1 %v5858_v31  ;;  %v5940_v31 = vld [vmem:[#allocation2 + $0x8b0] ss:$8 sps:$4 sm:$0xff]  }
 0x683   :  { %3995 = vmatpush1.bf16.msra.mxu1 %v5856_v25  ;;  %v5945_v25 = vld [vmem:[#allocation2 + $0x8c4] ss:$8 sps:$4 sm:$0xff]  }
 0x684   :  { %3996 = vmatprep.subr.bf16.mxu1 %v5864_v35  ;;  %v5943_v35 = vld [vmem:[#allocation2 + $0x8c0] ss:$8 sps:$4 sm:$0xff]  }
 0x687   :  { %3997 = vmatpush1.bf16.msra.mxu1 %v5862_v37  ;;  %v5948_v37 = vld [vmem:[#allocation2 + $0x8d4] ss:$8 sps:$4 sm:$0xff]  }
 0x688   :  { %3998 = vmatprep.subr.bf16.mxu1 %v5870_v38  ;;  %v5946_v38 = vld [vmem:[#allocation2 + $0x8d0] ss:$8 sps:$4 sm:$0xff]  }
 0x68b   :  { %3999 = vmatpush1.bf16.msra.mxu1 %v5868_v39  ;;  %v5951_v39 = vld [vmem:[#allocation2 + $0x8e4] ss:$8 sps:$4 sm:$0xff]  }
 0x68c   :  { %4000 = vmatprep.subr.bf16.mxu1 %v5876_v6  ;;  %v5949_v6 = vld [vmem:[#allocation2 + $0x8e0] ss:$8 sps:$4 sm:$0xff]  }
 0x68f   :  { %4001 = vmatpush1.bf16.msra.mxu1 %v5874_v40  ;;  %v5954_v40 = vld [vmem:[#allocation2 + $0x8f4] ss:$8 sps:$4 sm:$0xff]  }
 0x690   :  { %4002 = vmatprep.subr.bf16.mxu1 %v5882_v41  ;;  %v5952_v41 = vld [vmem:[#allocation2 + $0x8f0] ss:$8 sps:$4 sm:$0xff]  }
 0x693   :  { %4003 = vmatpush1.bf16.msra.mxu1 %v5880_v42  ;;  %v5957_v42 = vld [vmem:[#allocation2 + $0x904] ss:$8 sps:$4 sm:$0xff]  }
 0x694   :  { %4004 = vmatprep.subr.bf16.mxu1 %v5888_v43  ;;  %v6237_v43 = vld [vmem:[#allocation6 + $0x20] ss:$8 sm:$0xf] }
 0x697   :  { %4005 = vmatpush1.bf16.msra.mxu1 %v5886_v44  ;;  %v3602_v44 = vrot.slane %v6237_v43, %v6157_v34 }
 0x698   :  { %4006 = vmatprep.subr.bf16.mxu1 %v5894_v45  ;;  %v3606_v45 = vrot.slane %v6237_v43, %v6160_v36 }
 0x69b   :  { %4007 = vmatpush1.bf16.msra.mxu1 %v5892_v46  ;;  %v3614_v46 = vrot.slane %v6237_v43, %v6195_v8 }
 0x69c   :  { %4008 = vmatprep.subr.bf16.mxu1 %v5900_v48 }
 0x69f   :  { %4009 = vmatpush1.bf16.msra.mxu1 %v5898_v50 }
 0x6a0   :  { %4010 = vmatprep.subr.bf16.mxu1 %v5906_v52 }
 0x6a3   :  { %4011 = vmatpush1.bf16.msra.mxu1 %v5904_v54 }
 0x739   :  { %v3517_v59 = vpop.f32.mrb[20].mxu1 }
 0x73a   :  { %v3518_v60 = vadd.f32 %v3517_v59, %v3316_v57  ;;  %v3519_v62 = vpop.f32.mrb[21].mxu1 }
 0x73b   :  { %v3520_v63 = vadd.f32 %v3519_v62, %v3320_v58  ;;  %v3521_v0 = vpop.f32.mrb[22].mxu1 }
 0x73c   :  { %vm3524_vm0 = vcmp.gt.f32.partialorder %v3518_v60, 0.0  ;;  %v3526_v1 = vmul.f32 0.2, %v3518_v60  ;;  %v3522_v2 = vpop.f32.mrb[23].mxu1 }
 0x73d   :  { %vm3525_vm1 = vcmp.gt.f32.partialorder %v3520_v63, 0.0  ;;  %v3527_v3 = vmul.f32 0.2, %v3520_v63 }
 0x73e   :  { %v3528_v5 = vsel %vm3524_vm0, %v3518_v60, %v3526_v1  ;;  %v5955_v1 = vld [vmem:[#allocation2 + $0x900] ss:$8 sps:$4 sm:$0xff]  }
 0x73f   :  { %v3529_v9 = vsel %vm3525_vm1, %v3520_v63, %v3527_v3  ;;  %v3530_v11 = vpack.c.bf16 %v3528_v5, %v3528_v5  ;;  %v5960_v3 = vld [vmem:[#allocation2 + $0x914] ss:$8 sps:$4 sm:$0xff]  }
 0x740   :  { %v3531_v10 = vpack.c.bf16 %v3529_v9, %v3529_v9  ;;  %v5958_v9 = vld [vmem:[#allocation2 + $0x910] ss:$8 sps:$4 sm:$0xff]  }
 0x742   :  { %3971 = vmatprep.mubr.bf16.mxu0 %v3531_v10  ;;  %4012 = vmatprep.mubr.bf16.mxu1 %v3531_v10  ;;  %v5963_v10 = vld [vmem:[#allocation2 + $0x924] ss:$8 sps:$4 sm:$0xff]  }
 0x743   :  { %3972 = vmatmul.mubr.bf16.vlgmr.msra.gmra.mrb[16].mxu0 %v3530_v11  ;;  %4013 = vmatmul.mubr.bf16.vlgmr.msra.gmra.mrb[24].mxu1 %v3530_v11  ;;  %v5966_v11 = vld [vmem:[#allocation2 + $0x934] ss:$8 sps:$4 sm:$0xff]  }
 0x744   :  { %4435 = vmatpush1.bf16.msra.mxu0 %v5907_v33  ;;  %v5961_v33 = vld [vmem:[#allocation2 + $0x920] ss:$8 sps:$4 sm:$0xff]  }
 0x745   :  { %4436 = vmatprep.subr.bf16.mxu0 %v5912_v12  ;;  %v5964_v12 = vld [vmem:[#allocation2 + $0x930] ss:$8 sps:$4 sm:$0xff]  }
 0x748   :  { %4437 = vmatpush1.bf16.msra.mxu0 %v5910_v14  ;;  %v5969_v14 = vld [vmem:[#allocation2 + $0x944] ss:$8 sps:$4 sm:$0xff]  }
 0x749   :  { %4438 = vmatprep.subr.bf16.mxu0 %v5915_v7  ;;  %v5967_v7 = vld [vmem:[#allocation2 + $0x940] ss:$8 sps:$4 sm:$0xff]  }
 0x74c   :  { %4439 = vmatpush1.bf16.msra.mxu0 %v5913_v15  ;;  %v5972_v15 = vld [vmem:[#allocation2 + $0x954] ss:$8 sps:$4 sm:$0xff]  }
 0x74d   :  { %4440 = vmatprep.subr.bf16.mxu0 %v5918_v16  ;;  %v5970_v16 = vld [vmem:[#allocation2 + $0x950] ss:$8 sps:$4 sm:$0xff]  }
 0x750   :  { %4441 = vmatpush1.bf16.msra.mxu0 %v5916_v17  ;;  %v5975_v17 = vld [vmem:[#allocation2 + $0x964] ss:$8 sps:$4 sm:$0xff]  }
 0x751   :  { %4442 = vmatprep.subr.bf16.mxu0 %v5921_v13  ;;  %v5973_v13 = vld [vmem:[#allocation2 + $0x960] ss:$8 sps:$4 sm:$0xff]  }
 0x754   :  { %4443 = vmatpush1.bf16.msra.mxu0 %v5919_v18  ;;  %v5978_v18 = vld [vmem:[#allocation2 + $0x974] ss:$8 sps:$4 sm:$0xff]  }
 0x755   :  { %4444 = vmatprep.subr.bf16.mxu0 %v5924_v19  ;;  %v5976_v19 = vld [vmem:[#allocation2 + $0x970] ss:$8 sps:$4 sm:$0xff]  }
 0x758   :  { %4445 = vmatpush1.bf16.msra.mxu0 %v5922_v20  ;;  %v5981_v20 = vld [vmem:[#allocation2 + $0x984] ss:$8 sps:$4 sm:$0xff]  }
 0x759   :  { %4446 = vmatprep.subr.bf16.mxu0 %v5927_v21  ;;  %v5979_v21 = vld [vmem:[#allocation2 + $0x980] ss:$8 sps:$4 sm:$0xff]  }
 0x75c   :  { %4447 = vmatpush1.bf16.msra.mxu0 %v5925_v22  ;;  %v5984_v22 = vld [vmem:[#allocation2 + $0x994] ss:$8 sps:$4 sm:$0xff]  }
 0x75d   :  { %4448 = vmatprep.subr.bf16.mxu0 %v5930_v23  ;;  %v5982_v23 = vld [vmem:[#allocation2 + $0x990] ss:$8 sps:$4 sm:$0xff]  }
 0x760   :  { %4449 = vmatpush1.bf16.msra.mxu0 %v5928_v24  ;;  %v5987_v24 = vld [vmem:[#allocation2 + $0x9a4] ss:$8 sps:$4 sm:$0xff]  }
 0x761   :  { %4450 = vmatprep.subr.bf16.mxu0 %v5933_v32  ;;  %v5985_v32 = vld [vmem:[#allocation2 + $0x9a0] ss:$8 sps:$4 sm:$0xff]  }
 0x764   :  { %4451 = vmatpush1.bf16.msra.mxu0 %v5931_v26  ;;  %v5990_v26 = vld [vmem:[#allocation2 + $0x9b4] ss:$8 sps:$4 sm:$0xff]  }
 0x765   :  { %4452 = vmatprep.subr.bf16.mxu0 %v5936_v4  ;;  %v5988_v4 = vld [vmem:[#allocation2 + $0x9b0] ss:$8 sps:$4 sm:$0xff]  }
 0x768   :  { %4453 = vmatpush1.bf16.msra.mxu0 %v5934_v28  ;;  %v5993_v28 = vld [vmem:[#allocation2 + $0x9c4] ss:$8 sps:$4 sm:$0xff]  }
 0x769   :  { %4454 = vmatprep.subr.bf16.mxu0 %v5939_v27  ;;  %v5991_v27 = vld [vmem:[#allocation2 + $0x9c0] ss:$8 sps:$4 sm:$0xff]  }
 0x76c   :  { %4455 = vmatpush1.bf16.msra.mxu0 %v5937_v29  ;;  %v5996_v29 = vld [vmem:[#allocation2 + $0x9d4] ss:$8 sps:$4 sm:$0xff]  }
 0x76d   :  { %4456 = vmatprep.subr.bf16.mxu0 %v5942_v30  ;;  %v3610_v30 = vrot.slane %v6237_v43, %v6206_v61  ;;  %v4102_v61 = vld [vmem:[#allocation6 + $0x21] ss:$8 sm:$0x3] }
 0x76e   :  { %v4111_v43 = vrot.slane %v4102_v61, %v6160_v36 }
 0x770   :  { %4457 = vmatpush1.bf16.msra.mxu0 %v5940_v31  ;;  %v5994_v31 = vld [vmem:[#allocation2 + $0x9d0] ss:$8 sps:$4 sm:$0xff]  }
 0x771   :  { %4458 = vmatprep.subr.bf16.mxu0 %v5945_v25  ;;  %v5999_v25 = vld [vmem:[#allocation2 + $0x9e4] ss:$8 sps:$4 sm:$0xff]  }
 0x774   :  { %4459 = vmatpush1.bf16.msra.mxu0 %v5943_v35 }
 0x775   :  { %4460 = vmatprep.subr.bf16.mxu0 %v5948_v37  ;;  %v5997_v37 = vld [vmem:[#allocation2 + $0x9e0] ss:$8 sps:$4 sm:$0xff]  }
 0x778   :  { %4461 = vmatpush1.bf16.msra.mxu0 %v5946_v38  ;;  %v6002_v38 = vld [vmem:[#allocation2 + $0x9f4] ss:$8 sps:$4 sm:$0xff]  }
 0x779   :  { %4462 = vmatprep.subr.bf16.mxu0 %v5951_v39 }
 0x77c   :  { %4463 = vmatpush1.bf16.msra.mxu0 %v5949_v6  ;;  %v6000_v6 = vld [vmem:[#allocation2 + $0x9f0] ss:$8 sps:$4 sm:$0xff]  }
 0x77d   :  { %4464 = vmatprep.subr.bf16.mxu0 %v5954_v40 }
 0x780   :  { %4465 = vmatpush1.bf16.msra.mxu0 %v5952_v41 }
 0x781   :  { %4475 = vmatprep.subr.bf16.mxu0 %v5957_v42  ;;  %v4107_v42 = vrot.slane %v4102_v61, %v6157_v34 }
 0x816   :  { %v3973_v47 = vpop.f32.mrb[16].mxu0  ;;  %v6245_v48 = vpop.f32.mrb[24].mxu1 }
 0x817   :  { %v3974_v49 = vadd.f32 %v3973_v47, %v3602_v44  ;;  %v3975_v50 = vpop.f32.mrb[17].mxu0  ;;  %v4016_v51 = vpop.f32.mrb[25].mxu1  ;;  %v4015_v35 = vadd.f32 %v6245_v48, %v3610_v30 }
 0x818   :  { %v3976_v52 = vadd.f32 %v3975_v50, %v3606_v45  ;;  %v4017_v53 = vadd.f32 %v4016_v51, %v3614_v46  ;;  %v3977_v54 = vpop.f32.mrb[18].mxu0  ;;  %v4018_v55 = vpop.f32.mrb[26].mxu1 }
 0x819   :  { %vm4021_vm2 = vcmp.gt.f32.partialorder %v3974_v49, 0.0  ;;  %v4025_v56 = vmul.f32 0.2, %v3974_v49  ;;  %v3978_v60 = vpop.f32.mrb[19].mxu0  ;;  %v4019_v62 = vpop.f32.mrb[27].mxu1  ;;  %vm4023_vm5 = vcmp.gt.f32.partialorder %v4015_v35, 0.0 }
 0x81a   :  { %vm4022_vm3 = vcmp.gt.f32.partialorder %v3976_v52, 0.0  ;;  %v4026_v57 = vmul.f32 0.2, %v3976_v52  ;;  %vm4024_vm4 = vcmp.gt.f32.partialorder %v4017_v53, 0.0  ;;  %v4028_v58 = vmul.f32 0.2, %v4017_v53 }
 0x81b   :  { %v4029_v59 = vsel %vm4021_vm2, %v3974_v49, %v4025_v56  ;;  %v4027_v39 = vmul.f32 0.2, %v4015_v35 }
 0x81c   :  { %v4030_v8 = vsel %vm4022_vm3, %v3976_v52, %v4026_v57  ;;  %v4032_v63 = vsel %vm4024_vm4, %v4017_v53, %v4028_v58  ;;  %v4033_v2 = vpack.c.bf16 %v4029_v59, %v4029_v59 }
 0x81d   :  { %v4034_v0 = vpack.c.bf16 %v4030_v8, %v4030_v8  ;;  %v4036_v5 = vpack.c.bf16 %v4032_v63, %v4032_v63  ;;  %v4031_v40 = vsel %vm4023_vm5, %v4015_v35, %v4027_v39 }
 0x81e   :  { %v4035_v41 = vpack.c.bf16 %v4031_v40, %v4031_v40 }
 0x81f   :  { %4466 = vmatprep.mubr.bf16.mxu0 %v4034_v0 }
 0x820   :  { %4467 = vmatmul.mubr.bf16.vlgmr.msra.gmra.mrb[20].mxu0 %v4033_v2 }
 0x821   :  { %4476 = vmatpush1.bf16.msra.mxu0 %v5955_v1  ;;  %4507 = vmatprep.mubr.bf16.mxu0 %v4036_v5 }
 0x822   :  { %4477 = vmatprep.subr.bf16.mxu0 %v5960_v3 }
 0x825   :  { %4478 = vmatpush1.bf16.msra.mxu0 %v5958_v9 }
 0x826   :  { %4479 = vmatprep.subr.bf16.mxu0 %v5963_v10 }
 0x829   :  { %4480 = vmatpush1.bf16.msra.mxu0 %v5961_v33 }
 0x82a   :  { %4481 = vmatprep.subr.bf16.mxu0 %v5966_v11 }
 0x82d   :  { %4482 = vmatpush1.bf16.msra.mxu0 %v5964_v12 }
 0x82e   :  { %4483 = vmatprep.subr.bf16.mxu0 %v5969_v14 }
 0x831   :  { %4484 = vmatpush1.bf16.msra.mxu0 %v5967_v7 }
 0x832   :  { %4485 = vmatprep.subr.bf16.mxu0 %v5972_v15 }
 0x835   :  { %4486 = vmatpush1.bf16.msra.mxu0 %v5970_v16 }
 0x836   :  { %4487 = vmatprep.subr.bf16.mxu0 %v5975_v17 }
 0x839   :  { %4488 = vmatpush1.bf16.msra.mxu0 %v5973_v13 }
 0x83a   :  { %4489 = vmatprep.subr.bf16.mxu0 %v5978_v18 }
 0x83d   :  { %4490 = vmatpush1.bf16.msra.mxu0 %v5976_v19 }
 0x83e   :  { %4491 = vmatprep.subr.bf16.mxu0 %v5981_v20 }
 0x841   :  { %4492 = vmatpush1.bf16.msra.mxu0 %v5979_v21 }
 0x842   :  { %4493 = vmatprep.subr.bf16.mxu0 %v5984_v22 }
 0x845   :  { %4494 = vmatpush1.bf16.msra.mxu0 %v5982_v23 }
 0x846   :  { %4495 = vmatprep.subr.bf16.mxu0 %v5987_v24 }
 0x849   :  { %4496 = vmatpush1.bf16.msra.mxu0 %v5985_v32 }
 0x84a   :  { %4497 = vmatprep.subr.bf16.mxu0 %v5990_v26 }
 0x84d   :  { %4498 = vmatpush1.bf16.msra.mxu0 %v5988_v4 }
 0x84e   :  { %4499 = vmatprep.subr.bf16.mxu0 %v5993_v28 }
 0x851   :  { %4500 = vmatpush1.bf16.msra.mxu0 %v5991_v27 }
 0x852   :  { %4501 = vmatprep.subr.bf16.mxu0 %v5996_v29 }
 0x855   :  { %4502 = vmatpush1.bf16.msra.mxu0 %v5994_v31 }
 0x856   :  { %4503 = vmatprep.subr.bf16.mxu0 %v5999_v25 }
 0x859   :  { %4504 = vmatpush1.bf16.msra.mxu0 %v5997_v37 }
 0x85a   :  { %4505 = vmatprep.subr.bf16.mxu0 %v6002_v38 }
 0x85d   :  { %4506 = vmatpush1.bf16.msra.mxu0 %v6000_v6 }
 0x860   :  { %4508 = vmatmul.mubr.bf16.vlgmr.msra.gmra.mrb[20].mxu0 %v4035_v41 }
 0x933   :  { %v4509_v44 = vpop.f32.mrb[20].mxu0 }
 0x934   :  { %v5108_v45 = vadd.f32 %v4509_v44, %v4107_v42  ;;  %v4511_v46 = vpop.f32.mrb[21].mxu0 }
 0x935   :  { %v5109_v47 = vadd.f32 %v4511_v46, %v4111_v43  ;;  %v4513_v48 = vpop.f32.mrb[22].mxu0 }
 0x936   :  { %4516 = vst [vmem:[%s6263_s5 + $0x10] sm:$0xff] %v5108_v45  ;;  %v4514_v49 = vpop.f32.mrb[23].mxu0 }
 0x937   :  { %4517 = vst [vmem:[%s6263_s5 + $0x18] sm:$0xff] %v5109_v47 }
 0x938   :  { %4522 = vsyncpa [#allocation3], 1 }
 0x939   :  { %4523 = vsyncpa [#allocation5], 1 }

</bundles_post_ra>
